<compile_context>
chip_gen: v6e
topology: v6e:2x2x1
jax: 0.10.0
libtpu: 0.0.40
codegen_flags: <defaults>
</compile_context>

<pallas_src>
import math

import jax
import jax.numpy as jnp
from jax.experimental import pallas as pl
from jax.experimental.pallas import tpu as pltpu

GROUPS = 6


def _pick_row_tile(n_rows, target=256):
    """Largest row tile <= target satisfying BlockSpec (8, 128) rules."""
    if n_rows <= target:
        return n_rows  # block dim == full array dim is always allowed
    best = None
    for t in range(8, target + 1, 8):
        if n_rows % t == 0:
            best = t
    return best if best is not None else n_rows


def grouped_linear_kernel(x_ref, w_ref, b_ref, o_ref):
    # x_ref: (tile, R*C_in)   w_ref: (R*C_in, R*C_out)  [grid-invariant, resident]
    # b_ref: (1, R*C_out)     o_ref: (tile, R*C_out)
    acc = jnp.dot(x_ref[...], w_ref[...], preferred_element_type=jnp.float32)
    o_ref[...] = (acc + b_ref[...]).astype(o_ref.dtype)


def _pack_params(weight, bias, R, G=GROUPS):
    """Build the row-packed block-diagonal weight (R*C_in, R*C_out) and bias (1, R*C_out).

    In a real model this is done once at parameter-load time, not per forward call.
    """
    C_out, icg = weight.shape
    ocg = C_out // G
    C_in = icg * G
    wt = weight.astype(jnp.float32)
    # Group block-diagonal (C_in, C_out):  Wbd[g*icg+i, g*ocg+o] = weight[g*ocg+o, i]
    w_g = wt.reshape(G, ocg, icg)                       # (G, ocg, icg)
    eye_g = jnp.eye(G, dtype=jnp.float32)
    wbd = jnp.einsum("goi,gh->giho", w_g, eye_g).reshape(C_in, C_out)
    # Row-packing block-diagonal (R*C_in, R*C_out): R copies of Wbd on the diagonal.
    eye_r = jnp.eye(R, dtype=jnp.float32)
    w_big = jnp.einsum("io,rs->riso", wbd, eye_r).reshape(R * C_in, R * C_out)
    b_big = jnp.tile(bias.astype(jnp.float32), R).reshape(1, R * C_out)
    return w_big, b_big


def grouped_linear(x, weight, bias):
    """x: (B, S, C_in); weight: (C_out, C_in // GROUPS); bias: (C_out,)."""
    B, S, C_in = x.shape
    C_out = weight.shape[0]
    G = GROUPS
    assert C_in % G == 0 and C_out % G == 0, "channels must be divisible by 6 groups"
    N = B * S

    # Row-packing factor: R rows per kernel row so load/store lane dims hit 128.
    R = 128 // math.gcd(128, C_out)
    # Guard: if channel counts are large, the packed weight would blow up;
    # fall back to R=1 (still correct, just masked stores for non-128 C_out).
    if (R * C_in) * (R * C_out) * 4 > 8 * 1024 * 1024:
        R = 1

    N_pad = -(-N // R) * R
    x2 = x.reshape(N, C_in)                    # free (row-major)
    if N_pad != N:
        x2 = jnp.pad(x2, ((0, N_pad - N), (0, 0)))
    num_rows = N_pad // R
    xp = x2.reshape(num_rows, R * C_in)        # free (row-major merge)

    w_big, b_big = _pack_params(weight, bias, R)
    w_big = w_big.astype(x.dtype)              # bf16 inputs -> bf16 weights (f32 accumulate)
    # TODO(synk): for a bandwidth-bound production path, cast x/w_big to bf16 here
    # (keeps f32 accumulation via preferred_element_type) to halve HBM traffic.

    tile = _pick_row_tile(num_rows)
    grid = (num_rows // tile,)

    out = pl.pallas_call(
        grouped_linear_kernel,
        out_shape=jax.ShapeDtypeStruct((num_rows, R * C_out), x.dtype),
        grid_spec=pltpu.PrefetchScalarGridSpec(
            num_scalar_prefetch=0,
            grid=grid,
            in_specs=[
                pl.BlockSpec((tile, R * C_in), lambda i: (i, 0)),
                pl.BlockSpec((R * C_in, R * C_out), lambda i: (0, 0)),  # resident
                pl.BlockSpec((1, R * C_out), lambda i: (0, 0)),         # resident
            ],
            out_specs=pl.BlockSpec((tile, R * C_out), lambda i: (i, 0)),
        ),
        compiler_params=pltpu.CompilerParams(
            dimension_semantics=("parallel",),   # independent row tiles (v7x: 2 TCs)
        ),
    )(xp, w_big, b_big)

    # Free row-major reshapes back to (B, S, C_out).
    y = out.reshape(N_pad, C_out)[:N].reshape(B, S, C_out)
    return y


if __name__ == "__main__":
    B, S = 2, 16
    in_channel, out_channel = 24, 36  # both divisible by 6 groups
    icg = in_channel // GROUPS
    ocg = out_channel // GROUPS

    key = jax.random.PRNGKey(0)
    kx, kw = jax.random.split(key)

    # Deterministic parameter init mirroring the module's __init__:
    #   nn.init.trunc_normal_(weight, std=0.02), nn.init.zeros_(bias)
    # Conv2d weight shape (C_out, C_in//groups, 1, 1) -> squeeze to (C_out, C_in//groups).
    weight = 0.02 * jax.random.truncated_normal(
        kw, -2.0, 2.0, (out_channel, in_channel // GROUPS), dtype=jnp.float32
    )
    bias = jnp.zeros((out_channel,), dtype=jnp.float32)

    x = jax.random.normal(kx, (B, S, in_channel), dtype=jnp.float32)

    y = jax.block_until_ready(grouped_linear(x, weight, bias))

    # Pure-JAX reference of the grouped 1x1 conv.
    ref = jnp.concatenate(
        [
            x[..., g * icg:(g + 1) * icg] @ weight[g * ocg:(g + 1) * ocg, :].T
            + bias[g * ocg:(g + 1) * ocg]
            for g in range(GROUPS)
        ],
        axis=-1,
    )

    assert y.shape == (B, S, out_channel)
    assert jnp.allclose(y, ref, atol=1e-5, rtol=1e-5)
    print("KERNEL_OK")
</pallas_src>

<mosaic_0001>
module attributes {stable_mosaic.version = 11 : i64} {
  func.func @grouped_linear_kernel(%arg0: i32, %arg1: memref<1x768xf32, #tpu.memory_space<vmem>>, %arg2: memref<768x1152xf32, #tpu.memory_space<vmem>>, %arg3: memref<1x1152xf32, #tpu.memory_space<vmem>>, %arg4: memref<1x1152xf32, #tpu.memory_space<vmem>>) attributes {dimension_semantics = [#tpu.dimension_semantics<parallel>], iteration_bounds = array<i64: 1>, scalar_prefetch = 0 : i64, scratch_operands = 0 : i64, tpu.core_type = #tpu.core_type<tc>, window_params = [{transform_indices = @transform_0, window_bounds = array<i64: 1, 768>}, {pipeline_mode = #tpu.pipeline_mode<synchronous>, transform_indices = @transform_1, window_bounds = array<i64: 768, 1152>}, {pipeline_mode = #tpu.pipeline_mode<synchronous>, transform_indices = @transform_2, window_bounds = array<i64: 1, 1152>}, {transform_indices = @transform_3, window_bounds = array<i64: 1, 1152>}]} {
    %c0 = arith.constant 0 : index
    %c0_0 = arith.constant 0 : index
    %0 = vector.load %arg1[%c0, %c0_0] : memref<1x768xf32, #tpu.memory_space<vmem>>, vector<1x768xf32>
    %c0_1 = arith.constant 0 : index
    %c0_2 = arith.constant 0 : index
    %1 = vector.load %arg2[%c0_1, %c0_2] : memref<768x1152xf32, #tpu.memory_space<vmem>>, vector<768x1152xf32>
    %cst = arith.constant dense<0.000000e+00> : vector<1x1152xf32>
    %2 = tpu.matmul %0, %1, %cst {dimension_numbers = #tpu.dot_dimension_numbers<[1], [0], [0], [1], [0, 0, 1, 1], [], []>} : vector<1x768xf32>, vector<768x1152xf32>, vector<1x1152xf32> -> vector<1x1152xf32>
    %c0_3 = arith.constant 0 : index
    %c0_4 = arith.constant 0 : index
    %3 = vector.load %arg3[%c0_3, %c0_4] : memref<1x1152xf32, #tpu.memory_space<vmem>>, vector<1x1152xf32>
    %4 = arith.addf %2, %3 : vector<1x1152xf32>
    %c0_5 = arith.constant 0 : index
    %c0_6 = arith.constant 0 : index
    %5 = vector.load %arg4[%c0_5, %c0_6] : memref<1x1152xf32, #tpu.memory_space<vmem>>, vector<1x1152xf32>
    tpu.vector_store %arg4[%c0_5, %c0_6], %4 {strides = array<i32>} : memref<1x1152xf32, #tpu.memory_space<vmem>>, vector<1x1152xf32>,
    return
  }
  func.func @transform_0(%arg0: i32) -> (i32, i32) {
    %c0_i32 = arith.constant 0 : i32
    %c0_i32_0 = arith.constant 0 : i32
    return %arg0, %c0_i32 : i32, i32
  }
  func.func @transform_1(%arg0: i32) -> (i32, i32) {
    %c0_i32 = arith.constant 0 : i32
    %c0_i32_0 = arith.constant 0 : i32
    %c0_i32_1 = arith.constant 0 : i32
    return %c0_i32, %c0_i32_0 : i32, i32
  }
  func.func @transform_2(%arg0: i32) -> (i32, i32) {
    %c0_i32 = arith.constant 0 : i32
    %c0_i32_0 = arith.constant 0 : i32
    %c0_i32_1 = arith.constant 0 : i32
    return %c0_i32, %c0_i32_0 : i32, i32
  }
  func.func @transform_3(%arg0: i32) -> (i32, i32) {
    %c0_i32 = arith.constant 0 : i32
    %c0_i32_0 = arith.constant 0 : i32
    return %arg0, %c0_i32 : i32, i32
  }
}

</mosaic_0001>

<bundles_post_ra>
// kernel: tpu_custom_call.1
= control target key start
LH: loop header
LB: loop body
LE: loop exit
PB: predicated region body
PF: predicated region fallthrough
CT: control target
= control target key end

     0   :  { %8 = vsyncpa [#allocation3], 0  ;;  %s2480_s0 = inlined_call_operand.hbm [shape: f32[1,768], index: 0, kind: input, shape index: {}]   ;;  %s2481_s1 = inlined_call_operand.hbm [shape: f32[768,1152], index: 1, kind: input, shape index: {}]   ;;  %s2482_s2 = inlined_call_operand.hbm [shape: f32[1,1152], index: 2, kind: input, shape index: {}]   ;;  %s2483_s3 = inlined_call_operand.hbm [shape: f32[1,1152], index: 3, kind: output, shape index: {}]  }
   0x1   :  { %9 = vsyncpa [#allocation6], 0 }
   0x2   :  { %10 = vsyncpa [#allocation4], 0  ;;  %s2354_s12 = smov [#allocation5]  }
   0x3   :  { %s26_s13 = sshll.u32 %s2354_s12, 4  ;;  %s27_s13 = int_to_ptr.vmem [resolvable:$true] %s26_s13 }
   0x4   :  { %s2276_s14 = scalar_lea.vmem %s27_s13, 110592  ;;  %p2281_p1 = scmp.lt.s32.totalorder %s27_s13, %s27_s13 }
   0x5   :  { %p2277_p0 = scmp.ne.s32.totalorder %s27_s13, %s2276_s14  ;;  %p2282_p2 = scmp.lt.s32.totalorder %s2276_s14, %s2276_s14 }
   0x7   :  { %p2283_p3 = por %p2282_p2, %p2281_p1 }
   0x9   :  { %p2284_p4 = pnand %p2283_p3, %p2277_p0 }
   0xb   :  { %2287 = shalt.err (!%p2284_p4)
}
   0xc   :  { %s2355_s15 = smov 1152   ;;  %s2356_s16 = smov 72  }
   0xd   :  { %32 = dma.hbm_to_vmem [thread:$0]  %s2481_s1, 110592, %s27_s13, [#allocation6], %s2355_s15, %s2355_s15, %s2356_s16  }
   0xe   :  { %s2357_s19 = smov [#allocation2]   ;;  %s2358_s21 = smov [#allocation7]  }
   0xf   :  { %s17_s20 = sshll.u32 %s2357_s19, 4  ;;  %s39_s22 = sshll.u32 %s2358_s21, 4  ;;  %s18_s20 = int_to_ptr.vmem [resolvable:$true] %s17_s20  ;;  %s40_s22 = int_to_ptr.vmem [resolvable:$true] %s39_s22 }
  0x10   :  { %s2296_s23 = scalar_lea.vmem %s18_s20, 96  ;;  %p2301_p6 = scmp.lt.s32.totalorder %s18_s20, %s18_s20 }
  0x11   :  { %p2297_p5 = scmp.ne.s32.totalorder %s18_s20, %s2296_s23  ;;  %p2302_p7 = scmp.lt.s32.totalorder %s2296_s23, %s2296_s23 }
  0x13   :  { %p2303_p8 = por %p2302_p7, %p2301_p6 }
  0x15   :  { %p2304_p9 = pnand %p2303_p8, %p2297_p5 }
  0x17   :  { %2307 = shalt.err (!%p2304_p9)
}
  0x18   :  { %20 = dma.hbm_to_vmem [thread:$0]  %s2480_s0, 96, %s18_s20, [#allocation3]  }
  0x19   :  { %s2316_s26 = scalar_lea.vmem %s40_s22, 144  ;;  %s2320_s1 = scalar_lea.vmem %s40_s22, 160 }
  0x1a   :  { %p2317_p10 = scmp.ne.s32.totalorder %s40_s22, %s2316_s26  ;;  %p2321_p11 = scmp.lt.s32.totalorder %s40_s22, %s40_s22 }
  0x1b   :  { %p2322_p12 = scmp.lt.s32.totalorder %s2320_s1, %s2316_s26 }
  0x1d   :  { %p2323_p13 = por %p2322_p12, %p2321_p11 }
  0x1f   :  { %p2324_p0 = pnand %p2323_p13, %p2317_p10 }
  0x21   :  { %2327 = shalt.err (!%p2324_p0)
}
  0x22   :  { %42 = dma.hbm_to_vmem [thread:$0]  %s2482_s2, 144, %s40_s22, [#allocation6]  }
  0x23   :  { %2348 = dma.done.wait [#allocation3], 96  }
  0x24   :  { %2349 = vsyncadd [#allocation3], 4294967200 }
  0x25   :  { %2350 = dma.done.wait [#allocation6], 110736  }
  0x26   :  { %2351 = vsyncadd [#allocation6], 4294856560  ;;  %v189_v0 = vld [vmem:[#allocation5 + $0x440] sm:$0xff]  ;;  %v188_v1 = vld [vmem:[#allocation5 + $0x438] sm:$0xff]  ;;  %s2360_s0 = smov [#allocation8]  }
  0x27   :  { %v180_v2 = vld [vmem:[#allocation5 + $0x3f8] sm:$0xff]  ;;  %997 = vmatprep.subr.mxu0 %v189_v0  ;;  %v477_v3 = vld [vmem:[#allocation5 + $0xd40] sm:$0xff]  ;;  %v179_v4 = vld [vmem:[#allocation5 + $0x3f0] sm:$0xff]  ;;  %s2145_s2 = sshll.u32 %s2360_s0, 4  ;;  %s2146_s2 = int_to_ptr.vmem [resolvable:$true] %s2145_s2 }
  0x28   :  { %v476_v5 = vld [vmem:[#allocation5 + $0xd38] sm:$0xff]  ;;  %998 = vmatpush1.msra.mxu0 %v188_v1  ;;  %1068 = vmatprep.subr.mxu1 %v477_v3  ;;  %v171_v6 = vld [vmem:[#allocation5 + $0x3b0] sm:$0xff]  ;;  %v170_v8 = vld [vmem:[#allocation5 + $0x3a8] sm:$0xff]  ;;  %s2328_s29 = scalar_lea.vmem %s2146_s2, 144  ;;  %s2332_s30 = scalar_lea.vmem %s2146_s2, 160 }
  0x29   :  { %v468_v7 = vld [vmem:[#allocation5 + $0xcf8] sm:$0xff]  ;;  %999 = vmatprep.subr.mxu0 %v180_v2  ;;  %1069 = vmatpush1.msra.mxu1 %v476_v5  ;;  %v467_v9 = vld [vmem:[#allocation5 + $0xcf0] sm:$0xff]  ;;  %v162_v11 = vld [vmem:[#allocation5 + $0x368] sm:$0xff]  ;;  %p2329_p1 = scmp.ne.s32.totalorder %s2146_s2, %s2328_s29  ;;  %p2333_p2 = scmp.lt.s32.totalorder %s2146_s2, %s2146_s2 }
  0x2a   :  { %v459_v10 = vld [vmem:[#allocation5 + $0xcb0] sm:$0xff]  ;;  %1000 = vmatpush1.msra.mxu0 %v179_v4  ;;  %1070 = vmatprep.subr.mxu1 %v468_v7  ;;  %v458_v12 = vld [vmem:[#allocation5 + $0xca8] sm:$0xff]  ;;  %v161_v13 = vld [vmem:[#allocation5 + $0x360] sm:$0xff]  ;;  %p2334_p3 = scmp.lt.s32.totalorder %s2332_s30, %s2328_s29 }
  0x2b   :  { %1001 = vmatprep.subr.mxu0 %v171_v6  ;;  %1071 = vmatpush1.msra.mxu1 %v467_v9  ;;  %v450_v14 = vld [vmem:[#allocation5 + $0xc68] sm:$0xff]  ;;  %v153_v15 = vld [vmem:[#allocation5 + $0x320] sm:$0xff]  ;;  %v152_v17 = vld [vmem:[#allocation5 + $0x318] sm:$0xff] }
  0x2c   :  { %1002 = vmatpush1.msra.mxu0 %v170_v8  ;;  %1072 = vmatprep.subr.mxu1 %v459_v10  ;;  %v449_v16 = vld [vmem:[#allocation5 + $0xc60] sm:$0xff]  ;;  %v144_v19 = vld [vmem:[#allocation5 + $0x2d8] sm:$0xff]  ;;  %v143_v21 = vld [vmem:[#allocation5 + $0x2d0] sm:$0xff]  ;;  %p2335_p4 = por %p2334_p3, %p2333_p2 }
  0x2d   :  { %1003 = vmatprep.subr.mxu0 %v162_v11  ;;  %1073 = vmatpush1.msra.mxu1 %v458_v12  ;;  %v441_v18 = vld [vmem:[#allocation5 + $0xc20] sm:$0xff]  ;;  %v440_v20 = vld [vmem:[#allocation5 + $0xc18] sm:$0xff]  ;;  %v135_v23 = vld [vmem:[#allocation5 + $0x290] sm:$0xff] }
  0x2e   :  { %1004 = vmatpush1.msra.mxu0 %v161_v13  ;;  %1074 = vmatprep.subr.mxu1 %v450_v14  ;;  %v432_v22 = vld [vmem:[#allocation5 + $0xbd8] sm:$0xff]  ;;  %v431_v24 = vld [vmem:[#allocation5 + $0xbd0] sm:$0xff]  ;;  %v134_v25 = vld [vmem:[#allocation5 + $0x288] sm:$0xff]  ;;  %p2336_p5 = pnand %p2335_p4, %p2329_p1 }
  0x2f   :  { %1005 = vmatprep.subr.mxu0 %v153_v15  ;;  %1075 = vmatpush1.msra.mxu1 %v449_v16  ;;  %v423_v26 = vld [vmem:[#allocation5 + $0xb90] sm:$0xff]  ;;  %v126_v27 = vld [vmem:[#allocation5 + $0x248] sm:$0xff]  ;;  %v125_v29 = vld [vmem:[#allocation5 + $0x240] sm:$0xff] }
  0x30   :  { %1006 = vmatpush1.msra.mxu0 %v152_v17  ;;  %1076 = vmatprep.subr.mxu1 %v441_v18  ;;  %v422_v28 = vld [vmem:[#allocation5 + $0xb88] sm:$0xff]  ;;  %v117_v31 = vld [vmem:[#allocation5 + $0x200] sm:$0xff]  ;;  %v116_v33 = vld [vmem:[#allocation5 + $0x1f8] sm:$0xff] }
  0x31   :  { %1007 = vmatprep.subr.mxu0 %v144_v19  ;;  %1077 = vmatpush1.msra.mxu1 %v440_v20  ;;  %v414_v30 = vld [vmem:[#allocation5 + $0xb48] sm:$0xff]  ;;  %v413_v32 = vld [vmem:[#allocation5 + $0xb40] sm:$0xff]  ;;  %v108_v35 = vld [vmem:[#allocation5 + $0x1b8] sm:$0xff] }
  0x32   :  { %1008 = vmatpush1.msra.mxu0 %v143_v21  ;;  %1078 = vmatprep.subr.mxu1 %v432_v22  ;;  %v405_v34 = vld [vmem:[#allocation5 + $0xb00] sm:$0xff]  ;;  %v404_v36 = vld [vmem:[#allocation5 + $0xaf8] sm:$0xff]  ;;  %v107_v37 = vld [vmem:[#allocation5 + $0x1b0] sm:$0xff] }
  0x33   :  { %1009 = vmatprep.subr.mxu0 %v135_v23  ;;  %1079 = vmatpush1.msra.mxu1 %v431_v24  ;;  %v396_v38 = vld [vmem:[#allocation5 + $0xab8] sm:$0xff]  ;;  %v99_v39 = vld [vmem:[#allocation5 + $0x170] sm:$0xff]  ;;  %v98_v41 = vld [vmem:[#allocation5 + $0x168] sm:$0xff] }
  0x34   :  { %1010 = vmatpush1.msra.mxu0 %v134_v25  ;;  %1080 = vmatprep.subr.mxu1 %v423_v26  ;;  %v395_v40 = vld [vmem:[#allocation5 + $0xab0] sm:$0xff]  ;;  %v90_v43 = vld [vmem:[#allocation5 + $0x128] sm:$0xff]  ;;  %v89_v45 = vld [vmem:[#allocation5 + $0x120] sm:$0xff] }
  0x35   :  { %1011 = vmatprep.subr.mxu0 %v126_v27  ;;  %1081 = vmatpush1.msra.mxu1 %v422_v28  ;;  %v387_v42 = vld [vmem:[#allocation5 + $0xa70] sm:$0xff]  ;;  %v386_v44 = vld [vmem:[#allocation5 + $0xa68] sm:$0xff]  ;;  %v81_v47 = vld [vmem:[#allocation5 + $0xe0] sm:$0xff] }
  0x36   :  { %1012 = vmatpush1.msra.mxu0 %v125_v29  ;;  %1082 = vmatprep.subr.mxu1 %v414_v30  ;;  %v378_v46 = vld [vmem:[#allocation5 + $0xa28] sm:$0xff]  ;;  %v377_v48 = vld [vmem:[#allocation5 + $0xa20] sm:$0xff]  ;;  %v80_v49 = vld [vmem:[#allocation5 + $0xd8] sm:$0xff] }
  0x37   :  { %1013 = vmatprep.subr.mxu0 %v117_v31  ;;  %1083 = vmatpush1.msra.mxu1 %v413_v32  ;;  %v369_v50 = vld [vmem:[#allocation5 + $0x9e0] sm:$0xff]  ;;  %v72_v51 = vld [vmem:[#allocation5 + $0x98] sm:$0xff]  ;;  %v71_v53 = vld [vmem:[#allocation5 + $0x90] sm:$0xff] }
  0x38   :  { %1014 = vmatpush1.msra.mxu0 %v116_v33  ;;  %1084 = vmatprep.subr.mxu1 %v405_v34  ;;  %v368_v52 = vld [vmem:[#allocation5 + $0x9d8] sm:$0xff]  ;;  %v63_v55 = vld [vmem:[#allocation5 + $0x50] sm:$0xff]  ;;  %v62_v57 = vld [vmem:[#allocation5 + $0x48] sm:$0xff] }
  0x39   :  { %1015 = vmatprep.subr.mxu0 %v108_v35  ;;  %1085 = vmatpush1.msra.mxu1 %v404_v36  ;;  %v360_v54 = vld [vmem:[#allocation5 + $0x998] sm:$0xff]  ;;  %v359_v56 = vld [vmem:[#allocation5 + $0x990] sm:$0xff]  ;;  %v54_v59 = vld [vmem:[#allocation5 + $0x8] sm:$0xff]  ;;  %v920_v35 = vlaneseq }
  0x3a   :  { %1016 = vmatpush1.msra.mxu0 %v107_v37  ;;  %1086 = vmatprep.subr.mxu1 %v396_v38  ;;  %v351_v58 = vld [vmem:[#allocation5 + $0x950] sm:$0xff]  ;;  %v350_v60 = vld [vmem:[#allocation5 + $0x948] sm:$0xff]  ;;  %v53_v61 = vld [vmem:[#allocation5] sm:$0xff] }
  0x3b   :  { %1017 = vmatprep.subr.mxu0 %v99_v39  ;;  %1087 = vmatpush1.msra.mxu1 %v395_v40  ;;  %v342_v62 = vld [vmem:[#allocation5 + $0x908] sm:$0xff]  ;;  %v333_v63 = vld [vmem:[#allocation5 + $0x8c0] sm:$0xff]  ;;  %v332_v1 = vld [vmem:[#allocation5 + $0x8b8] sm:$0xff]  ;;  %vm2136_vm0 = vcmp.lt.s32.totalorder %v920_v35, 128 }
  0x3c   :  { %1018 = vmatpush1.msra.mxu0 %v98_v41  ;;  %1088 = vmatprep.subr.mxu1 %v387_v42  ;;  %v341_v0 = vld [vmem:[#allocation5 + $0x900] sm:$0xff]  ;;  %v324_v3 = vld [vmem:[#allocation5 + $0x878] sm:$0xff]  ;;  %v323_v5 = vld [vmem:[#allocation5 + $0x870] sm:$0xff] }
  0x3d   :  { %1019 = vmatprep.subr.mxu0 %v90_v43  ;;  %1089 = vmatpush1.msra.mxu1 %v386_v44  ;;  %v621_v2 = vld [vmem:[#allocation5 + $0x11c0] sm:$0xff]  ;;  %v620_v4 = vld [vmem:[#allocation5 + $0x11b8] sm:$0xff]  ;;  %v315_v7 = vld [vmem:[#allocation5 + $0x830] sm:$0xff]  ;;  %v2391_v44 = vshrl.u32 %v920_v35, 7 }
  0x3e   :  { %1020 = vmatpush1.msra.mxu0 %v89_v45  ;;  %1090 = vmatprep.subr.mxu1 %v378_v46  ;;  %v612_v6 = vld [vmem:[#allocation5 + $0x1178] sm:$0xff]  ;;  %v611_v8 = vld [vmem:[#allocation5 + $0x1170] sm:$0xff]  ;;  %v314_v9 = vld [vmem:[#allocation5 + $0x828] sm:$0xff] }
  0x3f   :  { %1021 = vmatprep.subr.mxu0 %v81_v47  ;;  %1091 = vmatpush1.msra.mxu1 %v377_v48  ;;  %v603_v10 = vld [vmem:[#allocation5 + $0x1130] sm:$0xff]  ;;  %v306_v11 = vld [vmem:[#allocation5 + $0x7e8] sm:$0xff]  ;;  %v305_v13 = vld [vmem:[#allocation5 + $0x7e0] sm:$0xff] }
  0x40   :  { %1022 = vmatpush1.msra.mxu0 %v80_v49  ;;  %1092 = vmatprep.subr.mxu1 %v369_v50  ;;  %v602_v12 = vld [vmem:[#allocation5 + $0x1128] sm:$0xff]  ;;  %v297_v15 = vld [vmem:[#allocation5 + $0x7a0] sm:$0xff]  ;;  %v296_v17 = vld [vmem:[#allocation5 + $0x798] sm:$0xff] }
  0x41   :  { %1023 = vmatprep.subr.mxu0 %v72_v51  ;;  %1093 = vmatpush1.msra.mxu1 %v368_v52  ;;  %v594_v14 = vld [vmem:[#allocation5 + $0x10e8] sm:$0xff]  ;;  %v593_v16 = vld [vmem:[#allocation5 + $0x10e0] sm:$0xff]  ;;  %v288_v19 = vld [vmem:[#allocation5 + $0x758] sm:$0xff] }
  0x42   :  { %1024 = vmatpush1.msra.mxu0 %v71_v53  ;;  %1094 = vmatprep.subr.mxu1 %v360_v54  ;;  %v585_v18 = vld [vmem:[#allocation5 + $0x10a0] sm:$0xff]  ;;  %v584_v20 = vld [vmem:[#allocation5 + $0x1098] sm:$0xff]  ;;  %v287_v21 = vld [vmem:[#allocation5 + $0x750] sm:$0xff]  ;;  %v926_v53 = vsub.s32 1, %v2391_v44 }
  0x43   :  { %1025 = vmatprep.subr.mxu0 %v63_v55  ;;  %1095 = vmatpush1.msra.mxu1 %v359_v56  ;;  %v576_v22 = vld [vmem:[#allocation5 + $0x1058] sm:$0xff]  ;;  %v279_v23 = vld [vmem:[#allocation5 + $0x710] sm:$0xff]  ;;  %v278_v25 = vld [vmem:[#allocation5 + $0x708] sm:$0xff] }
  0x44   :  { %1026 = vmatpush1.msra.mxu0 %v62_v57  ;;  %1096 = vmatprep.subr.mxu1 %v351_v58  ;;  %v575_v24 = vld [vmem:[#allocation5 + $0x1050] sm:$0xff]  ;;  %v270_v27 = vld [vmem:[#allocation5 + $0x6c8] sm:$0xff]  ;;  %v269_v29 = vld [vmem:[#allocation5 + $0x6c0] sm:$0xff] }
  0x45   :  { %1027 = vmatprep.subr.mxu0 %v54_v59  ;;  %1097 = vmatpush1.msra.mxu1 %v350_v60  ;;  %v567_v26 = vld [vmem:[#allocation5 + $0x1010] sm:$0xff]  ;;  %v566_v28 = vld [vmem:[#allocation5 + $0x1008] sm:$0xff]  ;;  %v261_v31 = vld [vmem:[#allocation5 + $0x680] sm:$0xff]  ;;  %v922_v59 = vsub.s32 0, %v2391_v44 }
  0x46   :  { %1028 = vmatpush1.msra.mxu0 %v53_v61  ;;  %1098 = vmatprep.subr.mxu1 %v342_v62  ;;  %v558_v30 = vld [vmem:[#allocation5 + $0xfc8] sm:$0xff]  ;;  %v557_v32 = vld [vmem:[#allocation5 + $0xfc0] sm:$0xff]  ;;  %v260_v33 = vld [vmem:[#allocation5 + $0x678] sm:$0xff] }
  0x47   :  { %1029 = vmatprep.subr.mxu0 %v333_v63  ;;  %1099 = vmatpush1.msra.mxu1 %v341_v0  ;;  %v549_v34 = vld [vmem:[#allocation5 + $0xf80] sm:$0xff]  ;;  %v252_v36 = vld [vmem:[#allocation5 + $0x638] sm:$0xff]  ;;  %v251_v38 = vld [vmem:[#allocation5 + $0x630] sm:$0xff] }
  0x48   :  { %1030 = vmatpush2.msra.mxu0 %v332_v1  ;;  %1100 = vmatprep.subr.mxu1 %v621_v2  ;;  %v548_v37 = vld [vmem:[#allocation5 + $0xf78] sm:$0xff]  ;;  %v243_v40 = vld [vmem:[#allocation5 + $0x5f0] sm:$0xff]  ;;  %v242_v42 = vld [vmem:[#allocation5 + $0x5e8] sm:$0xff]  ;;  %v934_v1 = vsub.s32 3, %v2391_v44 }
  0x49   :  { %1031 = vmatprep.subr.mxu0 %v324_v3  ;;  %1101 = vmatpush2.msra.mxu1 %v620_v4  ;;  %v540_v39 = vld [vmem:[#allocation5 + $0xf38] sm:$0xff]  ;;  %v539_v41 = vld [vmem:[#allocation5 + $0xf30] sm:$0xff]  ;;  %v234_v45 = vld [vmem:[#allocation5 + $0x5a8] sm:$0xff]  ;;  %v930_v3 = vsub.s32 2, %v2391_v44 }
  0x4a   :  { %1032 = vmatpush2.msra.mxu0 %v323_v5  ;;  %1102 = vmatprep.subr.mxu1 %v612_v6  ;;  %v531_v43 = vld [vmem:[#allocation5 + $0xef0] sm:$0xff]  ;;  %v530_v46 = vld [vmem:[#allocation5 + $0xee8] sm:$0xff]  ;;  %v233_v47 = vld [vmem:[#allocation5 + $0x5a0] sm:$0xff] }
  0x4b   :  { %1033 = vmatprep.subr.mxu0 %v315_v7  ;;  %1103 = vmatpush2.msra.mxu1 %v611_v8  ;;  %v522_v48 = vld [vmem:[#allocation5 + $0xea8] sm:$0xff]  ;;  %v225_v49 = vld [vmem:[#allocation5 + $0x560] sm:$0xff]  ;;  %v224_v51 = vld [vmem:[#allocation5 + $0x558] sm:$0xff] }
  0x4c   :  { %1034 = vmatpush2.msra.mxu0 %v314_v9  ;;  %1104 = vmatprep.subr.mxu1 %v603_v10  ;;  %v521_v50 = vld [vmem:[#allocation5 + $0xea0] sm:$0xff]  ;;  %v216_v54 = vld [vmem:[#allocation5 + $0x518] sm:$0xff]  ;;  %v215_v57 = vld [vmem:[#allocation5 + $0x510] sm:$0xff] }
  0x4d   :  { %1035 = vmatprep.subr.mxu0 %v306_v11  ;;  %1105 = vmatpush2.msra.mxu1 %v602_v12  ;;  %v513_v52 = vld [vmem:[#allocation5 + $0xe60] sm:$0xff]  ;;  %v512_v55 = vld [vmem:[#allocation5 + $0xe58] sm:$0xff]  ;;  %v207_v60 = vld [vmem:[#allocation5 + $0x4d0] sm:$0xff] }
  0x4e   :  { %1036 = vmatpush2.msra.mxu0 %v305_v13  ;;  %1106 = vmatprep.subr.mxu1 %v594_v14  ;;  %v2394_v56 = vld [vmem:[#allocation2] sm:$0x3f]  ;;  %v503_v61 = vld [vmem:[#allocation5 + $0xe10] sm:$0xff]  ;;  %v206_v62 = vld [vmem:[#allocation5 + $0x4c8] sm:$0xff] }
  0x4f   :  { %1037 = vmatprep.subr.mxu0 %v297_v15  ;;  %1107 = vmatpush2.msra.mxu1 %v593_v16  ;;  %v504_v58 = vld [vmem:[#allocation5 + $0xe18] sm:$0xff]  ;;  %v495_v63 = vld [vmem:[#allocation5 + $0xdd0] sm:$0xff]  ;;  %v2400_v0 = vrot.slane %v2394_v56, %v926_v53  ;;  %v198_v2 = vld [vmem:[#allocation5 + $0x488] sm:$0xff]  ;;  %v2407_v6 = vrot.slane %v2394_v56, %v922_v59  ;;  %v2413_v10 = vrot.slane %v2394_v56, %v934_v1 }
  0x50   :  { %1038 = vmatpush2.msra.mxu0 %v296_v17  ;;  %1108 = vmatprep.subr.mxu1 %v585_v18  ;;  %v197_v4 = vld [vmem:[#allocation5 + $0x480] sm:$0xff]  ;;  %v494_v5 = vld [vmem:[#allocation5 + $0xdc8] sm:$0xff]  ;;  %v764_v11 = vld [vmem:[#allocation5 + $0x1638] sm:$0xff]  ;;  %v2418_v12 = vrot.slane %v2394_v56, %v930_v3 }
  0x51   :  { %1039 = vmatprep.subr.mxu0 %v288_v19  ;;  %1109 = vmatpush2.msra.mxu1 %v584_v20  ;;  %v486_v7 = vld [vmem:[#allocation5 + $0xd88] sm:$0xff]  ;;  %v765_v8 = vld [vmem:[#allocation5 + $0x1640] sm:$0xff]  ;;  %v756_v13 = vld [vmem:[#allocation5 + $0x15f8] sm:$0xff] }
  0x52   :  { %1040 = vmatpush2.msra.mxu0 %v287_v21  ;;  %1110 = vmatprep.subr.mxu1 %v576_v22  ;;  %v485_v9 = vld [vmem:[#allocation5 + $0xd80] sm:$0xff]  ;;  %v191_v14 = vld [vmem:[#allocation5 + $0x450] sm:$0xff]  ;;  %v190_v16 = vld [vmem:[#allocation5 + $0x448] sm:$0xff] }
  0x53   :  { %1041 = vmatprep.subr.mxu0 %v279_v23  ;;  %1111 = vmatpush2.msra.mxu1 %v575_v24  ;;  %v755_v15 = vld [vmem:[#allocation5 + $0x15f0] sm:$0xff]  ;;  %v182_v18 = vld [vmem:[#allocation5 + $0x408] sm:$0xff]  ;;  %v181_v20 = vld [vmem:[#allocation5 + $0x400] sm:$0xff] }
  0x54   :  { %1042 = vmatpush2.msra.mxu0 %v278_v25  ;;  %1112 = vmatprep.subr.mxu1 %v567_v26  ;;  %v747_v17 = vld [vmem:[#allocation5 + $0x15b0] sm:$0xff]  ;;  %v746_v19 = vld [vmem:[#allocation5 + $0x15a8] sm:$0xff]  ;;  %v173_v22 = vld [vmem:[#allocation5 + $0x3c0] sm:$0xff] }
  0x55   :  { %1043 = vmatprep.subr.mxu0 %v270_v27  ;;  %1113 = vmatpush2.msra.mxu1 %v566_v28  ;;  %v738_v21 = vld [vmem:[#allocation5 + $0x1568] sm:$0xff]  ;;  %v737_v23 = vld [vmem:[#allocation5 + $0x1560] sm:$0xff]  ;;  %v172_v24 = vld [vmem:[#allocation5 + $0x3b8] sm:$0xff] }
  0x56   :  { %1044 = vmatpush2.msra.mxu0 %v269_v29  ;;  %1114 = vmatprep.subr.mxu1 %v558_v30  ;;  %v729_v25 = vld [vmem:[#allocation5 + $0x1520] sm:$0xff]  ;;  %v164_v26 = vld [vmem:[#allocation5 + $0x378] sm:$0xff]  ;;  %v163_v28 = vld [vmem:[#allocation5 + $0x370] sm:$0xff] }
  0x57   :  { %1045 = vmatprep.subr.mxu0 %v261_v31  ;;  %1115 = vmatpush2.msra.mxu1 %v557_v32  ;;  %v728_v27 = vld [vmem:[#allocation5 + $0x1518] sm:$0xff]  ;;  %v155_v30 = vld [vmem:[#allocation5 + $0x330] sm:$0xff]  ;;  %v154_v32 = vld [vmem:[#allocation5 + $0x328] sm:$0xff] }
  0x58   :  { %1046 = vmatpush2.msra.mxu0 %v260_v33  ;;  %1116 = vmatprep.subr.mxu1 %v549_v34  ;;  %v720_v29 = vld [vmem:[#allocation5 + $0x14d8] sm:$0xff]  ;;  %v719_v31 = vld [vmem:[#allocation5 + $0x14d0] sm:$0xff]  ;;  %v146_v34 = vld [vmem:[#allocation5 + $0x2e8] sm:$0xff] }
  0x59   :  { %1047 = vmatprep.subr.mxu0 %v252_v36  ;;  %1117 = vmatpush2.msra.mxu1 %v548_v37  ;;  %v711_v33 = vld [vmem:[#allocation5 + $0x1490] sm:$0xff]  ;;  %v710_v36 = vld [vmem:[#allocation5 + $0x1488] sm:$0xff]  ;;  %v145_v37 = vld [vmem:[#allocation5 + $0x2e0] sm:$0xff] }
  0x5a   :  { %1048 = vmatpush2.msra.mxu0 %v251_v38  ;;  %1118 = vmatprep.subr.mxu1 %v540_v39  ;;  %v702_v38 = vld [vmem:[#allocation5 + $0x1448] sm:$0xff]  ;;  %v137_v39 = vld [vmem:[#allocation5 + $0x2a0] sm:$0xff] }
  0x5b   :  { %1049 = vmatprep.subr.mxu0 %v243_v40  ;;  %1119 = vmatpush2.msra.mxu1 %v539_v41  ;;  %v701_v40 = vld [vmem:[#allocation5 + $0x1440] sm:$0xff]  ;;  %v136_v41 = vld [vmem:[#allocation5 + $0x298] sm:$0xff] }
  0x5c   :  { %1050 = vmatpush2.msra.mxu0 %v242_v42  ;;  %1120 = vmatprep.subr.mxu1 %v531_v43  ;;  %v693_v42 = vld [vmem:[#allocation5 + $0x1400] sm:$0xff]  ;;  %v128_v43 = vld [vmem:[#allocation5 + $0x258] sm:$0xff] }
  0x5d   :  { %1051 = vmatprep.subr.mxu0 %v234_v45  ;;  %1121 = vmatpush2.msra.mxu1 %v530_v46  ;;  %v692_v45 = vld [vmem:[#allocation5 + $0x13f8] sm:$0xff]  ;;  %v127_v46 = vld [vmem:[#allocation5 + $0x250] sm:$0xff] }
  0x5e   :  { %1052 = vmatpush2.msra.mxu0 %v233_v47  ;;  %1122 = vmatprep.subr.mxu1 %v522_v48  ;;  %v684_v47 = vld [vmem:[#allocation5 + $0x13b8] sm:$0xff]  ;;  %v119_v48 = vld [vmem:[#allocation5 + $0x210] sm:$0xff] }
  0x5f   :  { %1053 = vmatprep.subr.mxu0 %v225_v49  ;;  %1123 = vmatpush2.msra.mxu1 %v521_v50  ;;  %v683_v49 = vld [vmem:[#allocation5 + $0x13b0] sm:$0xff]  ;;  %v118_v50 = vld [vmem:[#allocation5 + $0x208] sm:$0xff] }
  0x60   :  { %1054 = vmatpush2.msra.mxu0 %v224_v51  ;;  %1124 = vmatprep.subr.mxu1 %v513_v52  ;;  %v675_v51 = vld [vmem:[#allocation5 + $0x1370] sm:$0xff]  ;;  %v110_v52 = vld [vmem:[#allocation5 + $0x1c8] sm:$0xff] }
  0x61   :  { %1055 = vmatprep.subr.mxu0 %v216_v54  ;;  %1125 = vmatpush2.msra.mxu1 %v512_v55  ;;  %v674_v54 = vld [vmem:[#allocation5 + $0x1368] sm:$0xff]  ;;  %v109_v55 = vld [vmem:[#allocation5 + $0x1c0] sm:$0xff] }
  0x62   :  { %1056 = vmatpush2.msra.mxu0 %v215_v57  ;;  %1126 = vmatprep.subr.mxu1 %v504_v58  ;;  %v666_v57 = vld [vmem:[#allocation5 + $0x1328] sm:$0xff]  ;;  %v101_v58 = vld [vmem:[#allocation5 + $0x180] sm:$0xff] }
  0x63   :  { %1057 = vmatprep.subr.mxu0 %v207_v60  ;;  %1127 = vmatpush2.msra.mxu1 %v503_v61  ;;  %v665_v60 = vld [vmem:[#allocation5 + $0x1320] sm:$0xff]  ;;  %v100_v61 = vld [vmem:[#allocation5 + $0x178] sm:$0xff] }
  0x64   :  { %1058 = vmatpush2.msra.mxu0 %v206_v62  ;;  %1128 = vmatprep.subr.mxu1 %v495_v63  ;;  %v657_v62 = vld [vmem:[#allocation5 + $0x12e0] sm:$0xff]  ;;  %v92_v63 = vld [vmem:[#allocation5 + $0x138] sm:$0xff] }
  0x65   :  { %1059 = vmatprep.subr.mxu0 %v198_v2  ;;  %1061 = vmatprep.mubr.f32.mxu0 %v2400_v0  ;;  %v656_v2 = vld [vmem:[#allocation5 + $0x12d8] sm:$0xff] }
  0x66   :  { %1060 = vmatpush2.msra.mxu0 %v197_v4  ;;  %1129 = vmatpush2.msra.mxu1 %v494_v5  ;;  %v91_v4 = vld [vmem:[#allocation5 + $0x130] sm:$0xff]  ;;  %v648_v5 = vld [vmem:[#allocation5 + $0x1298] sm:$0xff] }
  0x67   :  { %1062 = vmatmul.mubr.f32.vlgmr.msra.gmra.mxu0 %v2407_v6  ;;  %1130 = vmatprep.subr.mxu1 %v486_v7  ;;  %v83_v7 = vld [vmem:[#allocation5 + $0xf0] sm:$0xff] }
  0x68   :  { %1139 = vmatprep.subr.mxu0 %v765_v8  ;;  %1131 = vmatpush2.msra.mxu1 %v485_v9  ;;  %v647_v8 = vld [vmem:[#allocation5 + $0x1290] sm:$0xff]  ;;  %v82_v9 = vld [vmem:[#allocation5 + $0xe8] sm:$0xff] }
  0x69   :  { %1132 = vmatprep.mubr.f32.mxu1 %v2413_v10  ;;  %1140 = vmatpush1.msra.mxu0 %v764_v11  ;;  %v639_v11 = vld [vmem:[#allocation5 + $0x1250] sm:$0xff] }
  0x6a   :  { %1133 = vmatmul.mubr.f32.vlgmr.msra.gmra.mxu1 %v2418_v12  ;;  %1141 = vmatprep.subr.mxu0 %v756_v13  ;;  %v74_v13 = vld [vmem:[#allocation5 + $0xa8] sm:$0xff] }
  0x6b   :  { %1210 = vmatprep.subr.mxu1 %v191_v14  ;;  %1142 = vmatpush1.msra.mxu0 %v755_v15  ;;  %v638_v14 = vld [vmem:[#allocation5 + $0x1248] sm:$0xff]  ;;  %v73_v15 = vld [vmem:[#allocation5 + $0xa0] sm:$0xff] }
  0x6c   :  { %1211 = vmatpush1.msra.mxu1 %v190_v16  ;;  %1143 = vmatprep.subr.mxu0 %v747_v17  ;;  %v630_v16 = vld [vmem:[#allocation5 + $0x1208] sm:$0xff]  ;;  %v65_v17 = vld [vmem:[#allocation5 + $0x60] sm:$0xff] }
  0x6d   :  { %1212 = vmatprep.subr.mxu1 %v182_v18  ;;  %1144 = vmatpush1.msra.mxu0 %v746_v19  ;;  %v629_v18 = vld [vmem:[#allocation5 + $0x1200] sm:$0xff]  ;;  %v64_v19 = vld [vmem:[#allocation5 + $0x58] sm:$0xff] }
  0x6e   :  { %1213 = vmatpush1.msra.mxu1 %v181_v20  ;;  %1145 = vmatprep.subr.mxu0 %v738_v21  ;;  %v909_v20 = vld [vmem:[#allocation5 + $0x1ac0] sm:$0xff]  ;;  %v56_v21 = vld [vmem:[#allocation5 + $0x18] sm:$0xff] }
  0x6f   :  { %1214 = vmatprep.subr.mxu1 %v173_v22  ;;  %1146 = vmatpush1.msra.mxu0 %v737_v23  ;;  %v908_v22 = vld [vmem:[#allocation5 + $0x1ab8] sm:$0xff]  ;;  %v55_v23 = vld [vmem:[#allocation5 + $0x10] sm:$0xff] }
  0x70   :  { %1215 = vmatpush1.msra.mxu1 %v172_v24  ;;  %1147 = vmatprep.subr.mxu0 %v729_v25  ;;  %v900_v24 = vld [vmem:[#allocation5 + $0x1a78] sm:$0xff]  ;;  %v335_v25 = vld [vmem:[#allocation5 + $0x8d0] sm:$0xff] }
  0x71   :  { %1216 = vmatprep.subr.mxu1 %v164_v26  ;;  %1148 = vmatpush1.msra.mxu0 %v728_v27  ;;  %v899_v26 = vld [vmem:[#allocation5 + $0x1a70] sm:$0xff]  ;;  %v334_v27 = vld [vmem:[#allocation5 + $0x8c8] sm:$0xff] }
  0x72   :  { %1217 = vmatpush1.msra.mxu1 %v163_v28  ;;  %1149 = vmatprep.subr.mxu0 %v720_v29  ;;  %v891_v28 = vld [vmem:[#allocation5 + $0x1a30] sm:$0xff]  ;;  %v326_v29 = vld [vmem:[#allocation5 + $0x888] sm:$0xff] }
  0x73   :  { %1218 = vmatprep.subr.mxu1 %v155_v30  ;;  %1150 = vmatpush1.msra.mxu0 %v719_v31  ;;  %v890_v30 = vld [vmem:[#allocation5 + $0x1a28] sm:$0xff]  ;;  %v325_v31 = vld [vmem:[#allocation5 + $0x880] sm:$0xff] }
  0x74   :  { %1219 = vmatpush1.msra.mxu1 %v154_v32  ;;  %1151 = vmatprep.subr.mxu0 %v711_v33  ;;  %v882_v32 = vld [vmem:[#allocation5 + $0x19e8] sm:$0xff]  ;;  %v317_v33 = vld [vmem:[#allocation5 + $0x840] sm:$0xff] }
  0x75   :  { %1220 = vmatprep.subr.mxu1 %v146_v34  ;;  %1152 = vmatpush1.msra.mxu0 %v710_v36  ;;  %v881_v34 = vld [vmem:[#allocation5 + $0x19e0] sm:$0xff]  ;;  %v316_v36 = vld [vmem:[#allocation5 + $0x838] sm:$0xff] }
  0x76   :  { %1221 = vmatpush1.msra.mxu1 %v145_v37  ;;  %1153 = vmatprep.subr.mxu0 %v702_v38  ;;  %v873_v37 = vld [vmem:[#allocation5 + $0x19a0] sm:$0xff]  ;;  %v308_v38 = vld [vmem:[#allocation5 + $0x7f8] sm:$0xff] }
  0x77   :  { %1222 = vmatprep.subr.mxu1 %v137_v39  ;;  %1154 = vmatpush1.msra.mxu0 %v701_v40  ;;  %v872_v39 = vld [vmem:[#allocation5 + $0x1998] sm:$0xff]  ;;  %v307_v40 = vld [vmem:[#allocation5 + $0x7f0] sm:$0xff] }
  0x78   :  { %1223 = vmatpush1.msra.mxu1 %v136_v41  ;;  %1155 = vmatprep.subr.mxu0 %v693_v42  ;;  %v864_v41 = vld [vmem:[#allocation5 + $0x1958] sm:$0xff]  ;;  %v299_v42 = vld [vmem:[#allocation5 + $0x7b0] sm:$0xff] }
  0x79   :  { %1224 = vmatprep.subr.mxu1 %v128_v43  ;;  %1156 = vmatpush1.msra.mxu0 %v692_v45  ;;  %v863_v43 = vld [vmem:[#allocation5 + $0x1950] sm:$0xff]  ;;  %v298_v45 = vld [vmem:[#allocation5 + $0x7a8] sm:$0xff] }
  0x7a   :  { %1225 = vmatpush1.msra.mxu1 %v127_v46  ;;  %1157 = vmatprep.subr.mxu0 %v684_v47  ;;  %v855_v46 = vld [vmem:[#allocation5 + $0x1910] sm:$0xff]  ;;  %v290_v47 = vld [vmem:[#allocation5 + $0x768] sm:$0xff] }
  0x7b   :  { %1226 = vmatprep.subr.mxu1 %v119_v48  ;;  %1158 = vmatpush1.msra.mxu0 %v683_v49  ;;  %v854_v48 = vld [vmem:[#allocation5 + $0x1908] sm:$0xff]  ;;  %v289_v49 = vld [vmem:[#allocation5 + $0x760] sm:$0xff] }
  0x7c   :  { %1227 = vmatpush1.msra.mxu1 %v118_v50  ;;  %1159 = vmatprep.subr.mxu0 %v675_v51  ;;  %v846_v50 = vld [vmem:[#allocation5 + $0x18c8] sm:$0xff]  ;;  %v281_v51 = vld [vmem:[#allocation5 + $0x720] sm:$0xff] }
  0x7d   :  { %1228 = vmatprep.subr.mxu1 %v110_v52  ;;  %1160 = vmatpush1.msra.mxu0 %v674_v54  ;;  %v845_v52 = vld [vmem:[#allocation5 + $0x18c0] sm:$0xff]  ;;  %v280_v54 = vld [vmem:[#allocation5 + $0x718] sm:$0xff] }
  0x7e   :  { %1229 = vmatpush1.msra.mxu1 %v109_v55  ;;  %1161 = vmatprep.subr.mxu0 %v666_v57  ;;  %v837_v55 = vld [vmem:[#allocation5 + $0x1880] sm:$0xff]  ;;  %v272_v57 = vld [vmem:[#allocation5 + $0x6d8] sm:$0xff] }
  0x7f   :  { %1230 = vmatprep.subr.mxu1 %v101_v58  ;;  %1162 = vmatpush1.msra.mxu0 %v665_v60  ;;  %v836_v58 = vld [vmem:[#allocation5 + $0x1878] sm:$0xff]  ;;  %v271_v60 = vld [vmem:[#allocation5 + $0x6d0] sm:$0xff] }
  0x80   :  { %1231 = vmatpush1.msra.mxu1 %v100_v61  ;;  %1163 = vmatprep.subr.mxu0 %v657_v62  ;;  %v828_v61 = vld [vmem:[#allocation5 + $0x1838] sm:$0xff]  ;;  %v263_v62 = vld [vmem:[#allocation5 + $0x690] sm:$0xff] }
  0x81   :  { %1232 = vmatprep.subr.mxu1 %v92_v63  ;;  %1164 = vmatpush1.msra.mxu0 %v656_v2  ;;  %v827_v63 = vld [vmem:[#allocation5 + $0x1830] sm:$0xff]  ;;  %v262_v2 = vld [vmem:[#allocation5 + $0x688] sm:$0xff] }
  0x82   :  { %1233 = vmatpush1.msra.mxu1 %v91_v4  ;;  %1165 = vmatprep.subr.mxu0 %v648_v5  ;;  %v819_v4 = vld [vmem:[#allocation5 + $0x17f0] sm:$0xff]  ;;  %v254_v5 = vld [vmem:[#allocation5 + $0x648] sm:$0xff] }
  0x83   :  { %1234 = vmatprep.subr.mxu1 %v83_v7  ;;  %1166 = vmatpush1.msra.mxu0 %v647_v8  ;;  %v818_v7 = vld [vmem:[#allocation5 + $0x17e8] sm:$0xff]  ;;  %v253_v8 = vld [vmem:[#allocation5 + $0x640] sm:$0xff] }
  0x84   :  { %1235 = vmatpush1.msra.mxu1 %v82_v9  ;;  %1167 = vmatprep.subr.mxu0 %v639_v11  ;;  %v810_v9 = vld [vmem:[#allocation5 + $0x17a8] sm:$0xff]  ;;  %v245_v11 = vld [vmem:[#allocation5 + $0x600] sm:$0xff] }
  0x85   :  { %1236 = vmatprep.subr.mxu1 %v74_v13  ;;  %1168 = vmatpush1.msra.mxu0 %v638_v14  ;;  %v809_v13 = vld [vmem:[#allocation5 + $0x17a0] sm:$0xff]  ;;  %v244_v14 = vld [vmem:[#allocation5 + $0x5f8] sm:$0xff] }
  0x86   :  { %1237 = vmatpush1.msra.mxu1 %v73_v15  ;;  %1169 = vmatprep.subr.mxu0 %v630_v16  ;;  %v801_v15 = vld [vmem:[#allocation5 + $0x1760] sm:$0xff]  ;;  %v236_v16 = vld [vmem:[#allocation5 + $0x5b8] sm:$0xff] }
  0x87   :  { %1238 = vmatprep.subr.mxu1 %v65_v17  ;;  %1170 = vmatpush1.msra.mxu0 %v629_v18  ;;  %v800_v17 = vld [vmem:[#allocation5 + $0x1758] sm:$0xff]  ;;  %v235_v18 = vld [vmem:[#allocation5 + $0x5b0] sm:$0xff] }
  0x88   :  { %1239 = vmatpush1.msra.mxu1 %v64_v19  ;;  %1171 = vmatprep.subr.mxu0 %v909_v20  ;;  %v792_v19 = vld [vmem:[#allocation5 + $0x1718] sm:$0xff]  ;;  %v227_v20 = vld [vmem:[#allocation5 + $0x570] sm:$0xff] }
  0x89   :  { %1240 = vmatprep.subr.mxu1 %v56_v21  ;;  %1172 = vmatpush2.msra.mxu0 %v908_v22  ;;  %v791_v21 = vld [vmem:[#allocation5 + $0x1710] sm:$0xff]  ;;  %v942_v22 = vsub.s32 5, %v2391_v44 }
  0x8a   :  { %1241 = vmatpush1.msra.mxu1 %v55_v23  ;;  %1173 = vmatprep.subr.mxu0 %v900_v24  ;;  %v226_v23 = vld [vmem:[#allocation5 + $0x568] sm:$0xff]  ;;  %v783_v24 = vld [vmem:[#allocation5 + $0x16d0] sm:$0xff] }
  0x8b   :  { %1242 = vmatprep.subr.mxu1 %v335_v25  ;;  %1174 = vmatpush2.msra.mxu0 %v899_v26  ;;  %v938_v25 = vsub.s32 4, %v2391_v44  ;;  %v218_v26 = vld [vmem:[#allocation5 + $0x528] sm:$0xff] }
  0x8c   :  { %1243 = vmatpush2.msra.mxu1 %v334_v27  ;;  %1175 = vmatprep.subr.mxu0 %v891_v28  ;;  %v782_v27 = vld [vmem:[#allocation5 + $0x16c8] sm:$0xff]  ;;  %v217_v28 = vld [vmem:[#allocation5 + $0x520] sm:$0xff] }
  0x8d   :  { %1244 = vmatprep.subr.mxu1 %v326_v29  ;;  %1176 = vmatpush2.msra.mxu0 %v890_v30  ;;  %v774_v29 = vld [vmem:[#allocation5 + $0x1688] sm:$0xff]  ;;  %v209_v30 = vld [vmem:[#allocation5 + $0x4e0] sm:$0xff] }
  0x8e   :  { %1245 = vmatpush2.msra.mxu1 %v325_v31  ;;  %1177 = vmatprep.subr.mxu0 %v882_v32  ;;  %v773_v31 = vld [vmem:[#allocation5 + $0x1680] sm:$0xff]  ;;  %v2428_v32 = vrot.slane %v2394_v56, %v942_v22 }
  0x8f   :  { %1246 = vmatprep.subr.mxu1 %v317_v33  ;;  %1178 = vmatpush2.msra.mxu0 %v881_v34  ;;  %v208_v33 = vld [vmem:[#allocation5 + $0x4d8] sm:$0xff]  ;;  %v2433_v34 = vrot.slane %v2394_v56, %v938_v25  ;;  %v469_v56 = vld [vmem:[#allocation5 + $0xd00] sm:$0xff] }
  0x90   :  { %1247 = vmatpush2.msra.mxu1 %v316_v36  ;;  %1179 = vmatprep.subr.mxu0 %v873_v37  ;;  %v200_v36 = vld [vmem:[#allocation5 + $0x498] sm:$0xff]  ;;  %v479_v37 = vld [vmem:[#allocation5 + $0xd50] sm:$0xff] }
  0x91   :  { %1248 = vmatprep.subr.mxu1 %v308_v38  ;;  %1180 = vmatpush2.msra.mxu0 %v872_v39  ;;  %v199_v38 = vld [vmem:[#allocation5 + $0x490] sm:$0xff]  ;;  %v478_v39 = vld [vmem:[#allocation5 + $0xd48] sm:$0xff] }
  0x92   :  { %1249 = vmatpush2.msra.mxu1 %v307_v40  ;;  %1181 = vmatprep.subr.mxu0 %v864_v41  ;;  %v470_v40 = vld [vmem:[#allocation5 + $0xd08] sm:$0xff]  ;;  %v767_v41 = vld [vmem:[#allocation5 + $0x1650] sm:$0xff] }
  0x93   :  { %1250 = vmatprep.subr.mxu1 %v299_v42  ;;  %1182 = vmatpush2.msra.mxu0 %v863_v43  ;;  %v766_v42 = vld [vmem:[#allocation5 + $0x1648] sm:$0xff]  ;;  %v461_v43 = vld [vmem:[#allocation5 + $0xcc0] sm:$0xff] }
  0x94   :  { %1251 = vmatpush2.msra.mxu1 %v298_v45  ;;  %1183 = vmatprep.subr.mxu0 %v855_v46  ;;  %v758_v45 = vld [vmem:[#allocation5 + $0x1608] sm:$0xff]  ;;  %v460_v46 = vld [vmem:[#allocation5 + $0xcb8] sm:$0xff] }
  0x95   :  { %1252 = vmatprep.subr.mxu1 %v290_v47  ;;  %1184 = vmatpush2.msra.mxu0 %v854_v48  ;;  %v757_v47 = vld [vmem:[#allocation5 + $0x1600] sm:$0xff]  ;;  %v452_v48 = vld [vmem:[#allocation5 + $0xc78] sm:$0xff] }
  0x96   :  { %1253 = vmatpush2.msra.mxu1 %v289_v49  ;;  %1185 = vmatprep.subr.mxu0 %v846_v50  ;;  %v749_v49 = vld [vmem:[#allocation5 + $0x15c0] sm:$0xff]  ;;  %v451_v50 = vld [vmem:[#allocation5 + $0xc70] sm:$0xff] }
  0x97   :  { %1254 = vmatprep.subr.mxu1 %v281_v51  ;;  %1186 = vmatpush2.msra.mxu0 %v845_v52  ;;  %v748_v51 = vld [vmem:[#allocation5 + $0x15b8] sm:$0xff]  ;;  %v443_v52 = vld [vmem:[#allocation5 + $0xc30] sm:$0xff] }
  0x98   :  { %1255 = vmatpush2.msra.mxu1 %v280_v54  ;;  %1187 = vmatprep.subr.mxu0 %v837_v55  ;;  %v740_v54 = vld [vmem:[#allocation5 + $0x1578] sm:$0xff]  ;;  %v442_v55 = vld [vmem:[#allocation5 + $0xc28] sm:$0xff] }
  0x99   :  { %1256 = vmatprep.subr.mxu1 %v272_v57  ;;  %1188 = vmatpush2.msra.mxu0 %v836_v58  ;;  %v739_v57 = vld [vmem:[#allocation5 + $0x1570] sm:$0xff]  ;;  %v434_v58 = vld [vmem:[#allocation5 + $0xbe8] sm:$0xff] }
  0x9a   :  { %1257 = vmatpush2.msra.mxu1 %v271_v60  ;;  %1189 = vmatprep.subr.mxu0 %v828_v61  ;;  %v731_v60 = vld [vmem:[#allocation5 + $0x1530] sm:$0xff]  ;;  %v433_v61 = vld [vmem:[#allocation5 + $0xbe0] sm:$0xff] }
  0x9b   :  { %1258 = vmatprep.subr.mxu1 %v263_v62  ;;  %1190 = vmatpush2.msra.mxu0 %v827_v63  ;;  %v730_v62 = vld [vmem:[#allocation5 + $0x1528] sm:$0xff]  ;;  %v425_v63 = vld [vmem:[#allocation5 + $0xba0] sm:$0xff] }
  0x9c   :  { %1259 = vmatpush2.msra.mxu1 %v262_v2  ;;  %1191 = vmatprep.subr.mxu0 %v819_v4  ;;  %v722_v2 = vld [vmem:[#allocation5 + $0x14e8] sm:$0xff]  ;;  %v424_v4 = vld [vmem:[#allocation5 + $0xb98] sm:$0xff] }
  0x9d   :  { %1260 = vmatprep.subr.mxu1 %v254_v5  ;;  %1192 = vmatpush2.msra.mxu0 %v818_v7  ;;  %v721_v5 = vld [vmem:[#allocation5 + $0x14e0] sm:$0xff]  ;;  %v416_v7 = vld [vmem:[#allocation5 + $0xb58] sm:$0xff] }
  0x9e   :  { %1261 = vmatpush2.msra.mxu1 %v253_v8  ;;  %1193 = vmatprep.subr.mxu0 %v810_v9  ;;  %v713_v8 = vld [vmem:[#allocation5 + $0x14a0] sm:$0xff]  ;;  %v415_v9 = vld [vmem:[#allocation5 + $0xb50] sm:$0xff] }
  0x9f   :  { %1262 = vmatprep.subr.mxu1 %v245_v11  ;;  %1194 = vmatpush2.msra.mxu0 %v809_v13  ;;  %v712_v11 = vld [vmem:[#allocation5 + $0x1498] sm:$0xff]  ;;  %v407_v13 = vld [vmem:[#allocation5 + $0xb10] sm:$0xff] }
  0xa0   :  { %1263 = vmatpush2.msra.mxu1 %v244_v14  ;;  %1195 = vmatprep.subr.mxu0 %v801_v15  ;;  %v704_v14 = vld [vmem:[#allocation5 + $0x1458] sm:$0xff]  ;;  %v406_v15 = vld [vmem:[#allocation5 + $0xb08] sm:$0xff] }
  0xa1   :  { %1264 = vmatprep.subr.mxu1 %v236_v16  ;;  %1196 = vmatpush2.msra.mxu0 %v800_v17  ;;  %v703_v16 = vld [vmem:[#allocation5 + $0x1450] sm:$0xff]  ;;  %v398_v17 = vld [vmem:[#allocation5 + $0xac8] sm:$0xff] }
  0xa2   :  { %1265 = vmatpush2.msra.mxu1 %v235_v18  ;;  %1197 = vmatprep.subr.mxu0 %v792_v19  ;;  %v695_v18 = vld [vmem:[#allocation5 + $0x1410] sm:$0xff]  ;;  %v397_v19 = vld [vmem:[#allocation5 + $0xac0] sm:$0xff] }
  0xa3   :  { %1266 = vmatprep.subr.mxu1 %v227_v20  ;;  %1198 = vmatpush2.msra.mxu0 %v791_v21  ;;  %v694_v20 = vld [vmem:[#allocation5 + $0x1408] sm:$0xff]  ;;  %v389_v21 = vld [vmem:[#allocation5 + $0xa80] sm:$0xff] }
  0xa4   :  { %1267 = vmatpush2.msra.mxu1 %v226_v23  ;;  %1199 = vmatprep.subr.mxu0 %v783_v24  ;;  %v686_v23 = vld [vmem:[#allocation5 + $0x13c8] sm:$0xff]  ;;  %v388_v24 = vld [vmem:[#allocation5 + $0xa78] sm:$0xff] }
  0xa5   :  { %1268 = vmatprep.subr.mxu1 %v218_v26  ;;  %1200 = vmatpush2.msra.mxu0 %v782_v27  ;;  %v685_v26 = vld [vmem:[#allocation5 + $0x13c0] sm:$0xff]  ;;  %v380_v27 = vld [vmem:[#allocation5 + $0xa38] sm:$0xff] }
  0xa6   :  { %1269 = vmatpush2.msra.mxu1 %v217_v28  ;;  %1201 = vmatprep.subr.mxu0 %v774_v29  ;;  %v677_v28 = vld [vmem:[#allocation5 + $0x1380] sm:$0xff]  ;;  %v379_v29 = vld [vmem:[#allocation5 + $0xa30] sm:$0xff] }
  0xa7   :  { %1270 = vmatprep.subr.mxu1 %v209_v30  ;;  %1202 = vmatpush2.msra.mxu0 %v773_v31  ;;  %v676_v30 = vld [vmem:[#allocation5 + $0x1378] sm:$0xff]  ;;  %v371_v31 = vld [vmem:[#allocation5 + $0x9f0] sm:$0xff] }
  0xa8   :  { %1203 = vmatprep.mubr.f32.mxu0 %v2428_v32  ;;  %1271 = vmatpush2.msra.mxu1 %v208_v33  ;;  %v668_v33 = vld [vmem:[#allocation5 + $0x1338] sm:$0xff] }
  0xa9   :  { %1204 = vmatmul.mubr.f32.vlgmr.msra.gmra.mxu0 %v2433_v34  ;;  %1272 = vmatprep.subr.mxu1 %v200_v36  ;;  %v370_v36 = vld [vmem:[#allocation5 + $0x9e8] sm:$0xff] }
  0xaa   :  { %1281 = vmatprep.subr.mxu0 %v479_v37  ;;  %1273 = vmatpush2.msra.mxu1 %v199_v38  ;;  %v667_v37 = vld [vmem:[#allocation5 + $0x1330] sm:$0xff]  ;;  %v362_v38 = vld [vmem:[#allocation5 + $0x9a8] sm:$0xff] }
  0xab   :  { %1282 = vmatpush1.msra.mxu0 %v478_v39  ;;  %1274 = vmatprep.mubr.f32.mxu1 %v2400_v0  ;;  %v659_v39 = vld [vmem:[#allocation5 + $0x12f0] sm:$0xff] }
  0xac   :  { %1283 = vmatprep.subr.mxu0 %v470_v40  ;;  %1352 = vmatprep.subr.mxu1 %v767_v41  ;;  %v361_v40 = vld [vmem:[#allocation5 + $0x9a0] sm:$0xff]  ;;  %v658_v41 = vld [vmem:[#allocation5 + $0x12e8] sm:$0xff] }
  0xad   :  { %1275 = vmatmul.mubr.f32.vlgmr.msra.gmra.mxu1 %v2407_v6  ;;  %1284 = vmatpush1.msra.mxu0 %v469_v56  ;;  %v353_v56 = vld [vmem:[#allocation5 + $0x960] sm:$0xff] }
  0xae   :  { %1353 = vmatpush1.msra.mxu1 %v766_v42  ;;  %1285 = vmatprep.subr.mxu0 %v461_v43  ;;  %v650_v42 = vld [vmem:[#allocation5 + $0x12a8] sm:$0xff]  ;;  %v352_v43 = vld [vmem:[#allocation5 + $0x958] sm:$0xff] }
  0xaf   :  { %1354 = vmatprep.subr.mxu1 %v758_v45  ;;  %1286 = vmatpush1.msra.mxu0 %v460_v46  ;;  %v649_v45 = vld [vmem:[#allocation5 + $0x12a0] sm:$0xff]  ;;  %v344_v46 = vld [vmem:[#allocation5 + $0x918] sm:$0xff] }
  0xb0   :  { %1355 = vmatpush1.msra.mxu1 %v757_v47  ;;  %1287 = vmatprep.subr.mxu0 %v452_v48  ;;  %v641_v47 = vld [vmem:[#allocation5 + $0x1260] sm:$0xff]  ;;  %v343_v48 = vld [vmem:[#allocation5 + $0x910] sm:$0xff] }
  0xb1   :  { %1356 = vmatprep.subr.mxu1 %v749_v49  ;;  %1288 = vmatpush1.msra.mxu0 %v451_v50  ;;  %v640_v49 = vld [vmem:[#allocation5 + $0x1258] sm:$0xff]  ;;  %v623_v50 = vld [vmem:[#allocation5 + $0x11d0] sm:$0xff] }
  0xb2   :  { %1357 = vmatpush1.msra.mxu1 %v748_v51  ;;  %1289 = vmatprep.subr.mxu0 %v443_v52  ;;  %v632_v51 = vld [vmem:[#allocation5 + $0x1218] sm:$0xff]  ;;  %v622_v52 = vld [vmem:[#allocation5 + $0x11c8] sm:$0xff] }
  0xb3   :  { %1358 = vmatprep.subr.mxu1 %v740_v54  ;;  %1290 = vmatpush1.msra.mxu0 %v442_v55  ;;  %v631_v54 = vld [vmem:[#allocation5 + $0x1210] sm:$0xff]  ;;  %v614_v55 = vld [vmem:[#allocation5 + $0x1188] sm:$0xff] }
  0xb4   :  { %1359 = vmatpush1.msra.mxu1 %v739_v57  ;;  %1291 = vmatprep.subr.mxu0 %v434_v58  ;;  %v911_v57 = vld [vmem:[#allocation5 + $0x1ad0] sm:$0xff]  ;;  %v613_v58 = vld [vmem:[#allocation5 + $0x1180] sm:$0xff] }
  0xb5   :  { %1360 = vmatprep.subr.mxu1 %v731_v60  ;;  %1292 = vmatpush1.msra.mxu0 %v433_v61  ;;  %v910_v60 = vld [vmem:[#allocation5 + $0x1ac8] sm:$0xff]  ;;  %v605_v61 = vld [vmem:[#allocation5 + $0x1140] sm:$0xff] }
  0xb6   :  { %1361 = vmatpush1.msra.mxu1 %v730_v62  ;;  %1293 = vmatprep.subr.mxu0 %v425_v63  ;;  %v902_v62 = vld [vmem:[#allocation5 + $0x1a88] sm:$0xff]  ;;  %v604_v63 = vld [vmem:[#allocation5 + $0x1138] sm:$0xff] }
  0xb7   :  { %1362 = vmatprep.subr.mxu1 %v722_v2  ;;  %1294 = vmatpush1.msra.mxu0 %v424_v4  ;;  %v901_v2 = vld [vmem:[#allocation5 + $0x1a80] sm:$0xff]  ;;  %v596_v4 = vld [vmem:[#allocation5 + $0x10f8] sm:$0xff] }
  0xb8   :  { %1363 = vmatpush1.msra.mxu1 %v721_v5  ;;  %1295 = vmatprep.subr.mxu0 %v416_v7  ;;  %v893_v5 = vld [vmem:[#allocation5 + $0x1a40] sm:$0xff]  ;;  %v595_v7 = vld [vmem:[#allocation5 + $0x10f0] sm:$0xff] }
  0xb9   :  { %1364 = vmatprep.subr.mxu1 %v713_v8  ;;  %1296 = vmatpush1.msra.mxu0 %v415_v9  ;;  %v892_v8 = vld [vmem:[#allocation5 + $0x1a38] sm:$0xff]  ;;  %v587_v9 = vld [vmem:[#allocation5 + $0x10b0] sm:$0xff] }
  0xba   :  { %1365 = vmatpush1.msra.mxu1 %v712_v11  ;;  %1297 = vmatprep.subr.mxu0 %v407_v13  ;;  %v884_v11 = vld [vmem:[#allocation5 + $0x19f8] sm:$0xff]  ;;  %v586_v13 = vld [vmem:[#allocation5 + $0x10a8] sm:$0xff] }
  0xbb   :  { %1366 = vmatprep.subr.mxu1 %v704_v14  ;;  %1298 = vmatpush1.msra.mxu0 %v406_v15  ;;  %v883_v14 = vld [vmem:[#allocation5 + $0x19f0] sm:$0xff]  ;;  %v578_v15 = vld [vmem:[#allocation5 + $0x1068] sm:$0xff] }
  0xbc   :  { %1367 = vmatpush1.msra.mxu1 %v703_v16  ;;  %1299 = vmatprep.subr.mxu0 %v398_v17  ;;  %v875_v16 = vld [vmem:[#allocation5 + $0x19b0] sm:$0xff]  ;;  %v577_v17 = vld [vmem:[#allocation5 + $0x1060] sm:$0xff] }
  0xbd   :  { %1368 = vmatprep.subr.mxu1 %v695_v18  ;;  %1300 = vmatpush1.msra.mxu0 %v397_v19  ;;  %v874_v18 = vld [vmem:[#allocation5 + $0x19a8] sm:$0xff]  ;;  %v569_v19 = vld [vmem:[#allocation5 + $0x1020] sm:$0xff] }
  0xbe   :  { %1369 = vmatpush1.msra.mxu1 %v694_v20  ;;  %1301 = vmatprep.subr.mxu0 %v389_v21  ;;  %v866_v20 = vld [vmem:[#allocation5 + $0x1968] sm:$0xff]  ;;  %v568_v21 = vld [vmem:[#allocation5 + $0x1018] sm:$0xff] }
  0xbf   :  { %1370 = vmatprep.subr.mxu1 %v686_v23  ;;  %1302 = vmatpush1.msra.mxu0 %v388_v24  ;;  %v865_v23 = vld [vmem:[#allocation5 + $0x1960] sm:$0xff]  ;;  %v560_v24 = vld [vmem:[#allocation5 + $0xfd8] sm:$0xff] }
  0xc0   :  { %1371 = vmatpush1.msra.mxu1 %v685_v26  ;;  %1303 = vmatprep.subr.mxu0 %v380_v27  ;;  %v857_v26 = vld [vmem:[#allocation5 + $0x1920] sm:$0xff]  ;;  %v559_v27 = vld [vmem:[#allocation5 + $0xfd0] sm:$0xff] }
  0xc1   :  { %1372 = vmatprep.subr.mxu1 %v677_v28  ;;  %1304 = vmatpush1.msra.mxu0 %v379_v29  ;;  %v856_v28 = vld [vmem:[#allocation5 + $0x1918] sm:$0xff]  ;;  %v551_v29 = vld [vmem:[#allocation5 + $0xf90] sm:$0xff] }
  0xc2   :  { %1373 = vmatpush1.msra.mxu1 %v676_v30  ;;  %1305 = vmatprep.subr.mxu0 %v371_v31  ;;  %v848_v30 = vld [vmem:[#allocation5 + $0x18d8] sm:$0xff]  ;;  %v550_v31 = vld [vmem:[#allocation5 + $0xf88] sm:$0xff] }
  0xc3   :  { %1374 = vmatprep.subr.mxu1 %v668_v33  ;;  %1306 = vmatpush1.msra.mxu0 %v370_v36  ;;  %v847_v33 = vld [vmem:[#allocation5 + $0x18d0] sm:$0xff]  ;;  %v542_v36 = vld [vmem:[#allocation5 + $0xf48] sm:$0xff] }
  0xc4   :  { %1375 = vmatpush1.msra.mxu1 %v667_v37  ;;  %1307 = vmatprep.subr.mxu0 %v362_v38  ;;  %v839_v37 = vld [vmem:[#allocation5 + $0x1890] sm:$0xff]  ;;  %v541_v38 = vld [vmem:[#allocation5 + $0xf40] sm:$0xff] }
  0xc5   :  { %1376 = vmatprep.subr.mxu1 %v659_v39  ;;  %1308 = vmatpush1.msra.mxu0 %v361_v40  ;;  %v838_v39 = vld [vmem:[#allocation5 + $0x1888] sm:$0xff]  ;;  %v533_v40 = vld [vmem:[#allocation5 + $0xf00] sm:$0xff] }
  0xc6   :  { %1377 = vmatpush1.msra.mxu1 %v658_v41  ;;  %1309 = vmatprep.subr.mxu0 %v353_v56  ;;  %v830_v41 = vld [vmem:[#allocation5 + $0x1848] sm:$0xff]  ;;  %v532_v56 = vld [vmem:[#allocation5 + $0xef8] sm:$0xff] }
  0xc7   :  { %1378 = vmatprep.subr.mxu1 %v650_v42  ;;  %1310 = vmatpush1.msra.mxu0 %v352_v43  ;;  %v829_v42 = vld [vmem:[#allocation5 + $0x1840] sm:$0xff]  ;;  %v524_v43 = vld [vmem:[#allocation5 + $0xeb8] sm:$0xff] }
  0xc8   :  { %1379 = vmatpush1.msra.mxu1 %v649_v45  ;;  %1311 = vmatprep.subr.mxu0 %v344_v46  ;;  %v821_v45 = vld [vmem:[#allocation5 + $0x1800] sm:$0xff]  ;;  %v523_v46 = vld [vmem:[#allocation5 + $0xeb0] sm:$0xff] }
  0xc9   :  { %1380 = vmatprep.subr.mxu1 %v641_v47  ;;  %1312 = vmatpush1.msra.mxu0 %v343_v48  ;;  %v820_v47 = vld [vmem:[#allocation5 + $0x17f8] sm:$0xff]  ;;  %v515_v48 = vld [vmem:[#allocation5 + $0xe70] sm:$0xff] }
  0xca   :  { %1381 = vmatpush1.msra.mxu1 %v640_v49  ;;  %1313 = vmatprep.subr.mxu0 %v623_v50  ;;  %v812_v49 = vld [vmem:[#allocation5 + $0x17b8] sm:$0xff]  ;;  %v514_v50 = vld [vmem:[#allocation5 + $0xe68] sm:$0xff] }
  0xcb   :  { %1382 = vmatprep.subr.mxu1 %v632_v51  ;;  %1314 = vmatpush2.msra.mxu0 %v622_v52  ;;  %v811_v51 = vld [vmem:[#allocation5 + $0x17b0] sm:$0xff]  ;;  %v506_v52 = vld [vmem:[#allocation5 + $0xe28] sm:$0xff] }
  0xcc   :  { %1383 = vmatpush1.msra.mxu1 %v631_v54  ;;  %1315 = vmatprep.subr.mxu0 %v614_v55  ;;  %v803_v54 = vld [vmem:[#allocation5 + $0x1770] sm:$0xff]  ;;  %v505_v55 = vld [vmem:[#allocation5 + $0xe20] sm:$0xff] }
  0xcd   :  { %1384 = vmatprep.subr.mxu1 %v911_v57  ;;  %1316 = vmatpush2.msra.mxu0 %v613_v58  ;;  %v802_v57 = vld [vmem:[#allocation5 + $0x1768] sm:$0xff]  ;;  %v497_v58 = vld [vmem:[#allocation5 + $0xde0] sm:$0xff] }
  0xce   :  { %1385 = vmatpush2.msra.mxu1 %v910_v60  ;;  %1317 = vmatprep.subr.mxu0 %v605_v61  ;;  %v794_v60 = vld [vmem:[#allocation5 + $0x1728] sm:$0xff]  ;;  %v496_v61 = vld [vmem:[#allocation5 + $0xdd8] sm:$0xff] }
  0xcf   :  { %1386 = vmatprep.subr.mxu1 %v902_v62  ;;  %1318 = vmatpush2.msra.mxu0 %v604_v63  ;;  %v793_v62 = vld [vmem:[#allocation5 + $0x1720] sm:$0xff]  ;;  %v488_v63 = vld [vmem:[#allocation5 + $0xd98] sm:$0xff] }
  0xd0   :  { %1387 = vmatpush2.msra.mxu1 %v901_v2  ;;  %1319 = vmatprep.subr.mxu0 %v596_v4  ;;  %v785_v2 = vld [vmem:[#allocation5 + $0x16e0] sm:$0xff]  ;;  %v487_v4 = vld [vmem:[#allocation5 + $0xd90] sm:$0xff] }
  0xd1   :  { %1388 = vmatprep.subr.mxu1 %v893_v5  ;;  %1320 = vmatpush2.msra.mxu0 %v595_v7  ;;  %v784_v5 = vld [vmem:[#allocation5 + $0x16d8] sm:$0xff] }
  0xd2   :  { %1389 = vmatpush2.msra.mxu1 %v892_v8  ;;  %1321 = vmatprep.subr.mxu0 %v587_v9  ;;  %v776_v7 = vld [vmem:[#allocation5 + $0x1698] sm:$0xff]  ;;  %v193_v8 = vld [vmem:[#allocation5 + $0x460] sm:$0xff]  ;;  %v775_v9 = vld [vmem:[#allocation5 + $0x1690] sm:$0xff] }
  0xd3   :  { %1390 = vmatprep.subr.mxu1 %v884_v11  ;;  %1322 = vmatpush2.msra.mxu0 %v586_v13  ;;  %v192_v11 = vld [vmem:[#allocation5 + $0x458] sm:$0xff] }
  0xd4   :  { %1391 = vmatpush2.msra.mxu1 %v883_v14  ;;  %1323 = vmatprep.subr.mxu0 %v578_v15  ;;  %v184_v13 = vld [vmem:[#allocation5 + $0x418] sm:$0xff]  ;;  %v481_v14 = vld [vmem:[#allocation5 + $0xd60] sm:$0xff]  ;;  %v183_v15 = vld [vmem:[#allocation5 + $0x410] sm:$0xff] }
  0xd5   :  { %1392 = vmatprep.subr.mxu1 %v875_v16  ;;  %1324 = vmatpush2.msra.mxu0 %v577_v17  ;;  %v480_v16 = vld [vmem:[#allocation5 + $0xd58] sm:$0xff]  ;;  %v175_v17 = vld [vmem:[#allocation5 + $0x3d0] sm:$0xff] }
  0xd6   :  { %1393 = vmatpush2.msra.mxu1 %v874_v18  ;;  %1325 = vmatprep.subr.mxu0 %v569_v19  ;;  %v472_v18 = vld [vmem:[#allocation5 + $0xd18] sm:$0xff]  ;;  %v174_v19 = vld [vmem:[#allocation5 + $0x3c8] sm:$0xff] }
  0xd7   :  { %1394 = vmatprep.subr.mxu1 %v866_v20  ;;  %1326 = vmatpush2.msra.mxu0 %v568_v21  ;;  %v471_v20 = vld [vmem:[#allocation5 + $0xd10] sm:$0xff]  ;;  %v166_v21 = vld [vmem:[#allocation5 + $0x388] sm:$0xff] }
  0xd8   :  { %1395 = vmatpush2.msra.mxu1 %v865_v23  ;;  %1327 = vmatprep.subr.mxu0 %v560_v24  ;;  %v463_v23 = vld [vmem:[#allocation5 + $0xcd0] sm:$0xff]  ;;  %v165_v24 = vld [vmem:[#allocation5 + $0x380] sm:$0xff] }
  0xd9   :  { %1396 = vmatprep.subr.mxu1 %v857_v26  ;;  %1328 = vmatpush2.msra.mxu0 %v559_v27  ;;  %v462_v26 = vld [vmem:[#allocation5 + $0xcc8] sm:$0xff]  ;;  %v157_v27 = vld [vmem:[#allocation5 + $0x340] sm:$0xff] }
  0xda   :  { %1397 = vmatpush2.msra.mxu1 %v856_v28  ;;  %1329 = vmatprep.subr.mxu0 %v551_v29  ;;  %v454_v28 = vld [vmem:[#allocation5 + $0xc88] sm:$0xff]  ;;  %v156_v29 = vld [vmem:[#allocation5 + $0x338] sm:$0xff] }
  0xdb   :  { %1398 = vmatprep.subr.mxu1 %v848_v30  ;;  %1330 = vmatpush2.msra.mxu0 %v550_v31  ;;  %v453_v30 = vld [vmem:[#allocation5 + $0xc80] sm:$0xff]  ;;  %v148_v31 = vld [vmem:[#allocation5 + $0x2f8] sm:$0xff] }
  0xdc   :  { %1399 = vmatpush2.msra.mxu1 %v847_v33  ;;  %1331 = vmatprep.subr.mxu0 %v542_v36  ;;  %v445_v33 = vld [vmem:[#allocation5 + $0xc40] sm:$0xff]  ;;  %v147_v36 = vld [vmem:[#allocation5 + $0x2f0] sm:$0xff] }
  0xdd   :  { %1400 = vmatprep.subr.mxu1 %v839_v37  ;;  %1332 = vmatpush2.msra.mxu0 %v541_v38  ;;  %v444_v37 = vld [vmem:[#allocation5 + $0xc38] sm:$0xff]  ;;  %v139_v38 = vld [vmem:[#allocation5 + $0x2b0] sm:$0xff] }
  0xde   :  { %1401 = vmatpush2.msra.mxu1 %v838_v39  ;;  %1333 = vmatprep.subr.mxu0 %v533_v40  ;;  %v436_v39 = vld [vmem:[#allocation5 + $0xbf8] sm:$0xff]  ;;  %v138_v40 = vld [vmem:[#allocation5 + $0x2a8] sm:$0xff] }
  0xdf   :  { %1402 = vmatprep.subr.mxu1 %v830_v41  ;;  %1334 = vmatpush2.msra.mxu0 %v532_v56  ;;  %v435_v41 = vld [vmem:[#allocation5 + $0xbf0] sm:$0xff]  ;;  %v130_v56 = vld [vmem:[#allocation5 + $0x268] sm:$0xff] }
  0xe0   :  { %1403 = vmatpush2.msra.mxu1 %v829_v42  ;;  %1335 = vmatprep.subr.mxu0 %v524_v43  ;;  %v427_v42 = vld [vmem:[#allocation5 + $0xbb0] sm:$0xff]  ;;  %v129_v43 = vld [vmem:[#allocation5 + $0x260] sm:$0xff] }
  0xe1   :  { %1404 = vmatprep.subr.mxu1 %v821_v45  ;;  %1336 = vmatpush2.msra.mxu0 %v523_v46  ;;  %v426_v45 = vld [vmem:[#allocation5 + $0xba8] sm:$0xff]  ;;  %v121_v46 = vld [vmem:[#allocation5 + $0x220] sm:$0xff] }
  0xe2   :  { %1405 = vmatpush2.msra.mxu1 %v820_v47  ;;  %1337 = vmatprep.subr.mxu0 %v515_v48  ;;  %v418_v47 = vld [vmem:[#allocation5 + $0xb68] sm:$0xff]  ;;  %v120_v48 = vld [vmem:[#allocation5 + $0x218] sm:$0xff] }
  0xe3   :  { %1406 = vmatprep.subr.mxu1 %v812_v49  ;;  %1338 = vmatpush2.msra.mxu0 %v514_v50  ;;  %v417_v49 = vld [vmem:[#allocation5 + $0xb60] sm:$0xff]  ;;  %v112_v50 = vld [vmem:[#allocation5 + $0x1d8] sm:$0xff] }
  0xe4   :  { %1407 = vmatpush2.msra.mxu1 %v811_v51  ;;  %1339 = vmatprep.subr.mxu0 %v506_v52  ;;  %v409_v51 = vld [vmem:[#allocation5 + $0xb20] sm:$0xff]  ;;  %v111_v52 = vld [vmem:[#allocation5 + $0x1d0] sm:$0xff] }
  0xe5   :  { %1408 = vmatprep.subr.mxu1 %v803_v54  ;;  %1340 = vmatpush2.msra.mxu0 %v505_v55  ;;  %v408_v54 = vld [vmem:[#allocation5 + $0xb18] sm:$0xff]  ;;  %v103_v55 = vld [vmem:[#allocation5 + $0x190] sm:$0xff] }
  0xe6   :  { %1409 = vmatpush2.msra.mxu1 %v802_v57  ;;  %1341 = vmatprep.subr.mxu0 %v497_v58  ;;  %v400_v57 = vld [vmem:[#allocation5 + $0xad8] sm:$0xff]  ;;  %v102_v58 = vld [vmem:[#allocation5 + $0x188] sm:$0xff] }
  0xe7   :  { %1410 = vmatprep.subr.mxu1 %v794_v60  ;;  %1342 = vmatpush2.msra.mxu0 %v496_v61  ;;  %v399_v60 = vld [vmem:[#allocation5 + $0xad0] sm:$0xff]  ;;  %v94_v61 = vld [vmem:[#allocation5 + $0x148] sm:$0xff] }
  0xe8   :  { %1411 = vmatpush2.msra.mxu1 %v793_v62  ;;  %1343 = vmatprep.subr.mxu0 %v488_v63  ;;  %v391_v62 = vld [vmem:[#allocation5 + $0xa90] sm:$0xff]  ;;  %v93_v63 = vld [vmem:[#allocation5 + $0x140] sm:$0xff] }
  0xe9   :  { %1412 = vmatprep.subr.mxu1 %v785_v2  ;;  %1344 = vmatpush2.msra.mxu0 %v487_v4  ;;  %v390_v2 = vld [vmem:[#allocation5 + $0xa88] sm:$0xff]  ;;  %v85_v4 = vld [vmem:[#allocation5 + $0x100] sm:$0xff] }
  0xea   :  { %1345 = vmatprep.mubr.f32.mxu0 %v2413_v10  ;;  %1413 = vmatpush2.msra.mxu1 %v784_v5  ;;  %v382_v5 = vld [vmem:[#allocation5 + $0xa48] sm:$0xff] }
  0xeb   :  { %1346 = vmatmul.mubr.f32.vlgmr.msra.gmra.mxu0 %v2418_v12  ;;  %1414 = vmatprep.subr.mxu1 %v776_v7  ;;  %v84_v7 = vld [vmem:[#allocation5 + $0xf8] sm:$0xff] }
  0xec   :  { %1423 = vmatprep.subr.mxu0 %v193_v8  ;;  %1415 = vmatpush2.msra.mxu1 %v775_v9  ;;  %v381_v8 = vld [vmem:[#allocation5 + $0xa40] sm:$0xff]  ;;  %v76_v9 = vld [vmem:[#allocation5 + $0xb8] sm:$0xff] }
  0xed   :  { %1416 = vmatprep.mubr.f32.mxu1 %v2428_v32  ;;  %1424 = vmatpush1.msra.mxu0 %v192_v11  ;;  %v373_v11 = vld [vmem:[#allocation5 + $0xa00] sm:$0xff] }
  0xee   :  { %1417 = vmatmul.mubr.f32.vlgmr.msra.gmra.mxu1 %v2433_v34  ;;  %1425 = vmatprep.subr.mxu0 %v184_v13  ;;  %v75_v13 = vld [vmem:[#allocation5 + $0xb0] sm:$0xff] }
  0xef   :  { %1494 = vmatprep.subr.mxu1 %v481_v14  ;;  %1426 = vmatpush1.msra.mxu0 %v183_v15  ;;  %v372_v14 = vld [vmem:[#allocation5 + $0x9f8] sm:$0xff]  ;;  %v67_v15 = vld [vmem:[#allocation5 + $0x70] sm:$0xff] }
  0xf0   :  { %1495 = vmatpush1.msra.mxu1 %v480_v16  ;;  %1427 = vmatprep.subr.mxu0 %v175_v17  ;;  %v364_v16 = vld [vmem:[#allocation5 + $0x9b8] sm:$0xff]  ;;  %v66_v17 = vld [vmem:[#allocation5 + $0x68] sm:$0xff] }
  0xf1   :  { %1496 = vmatprep.subr.mxu1 %v472_v18  ;;  %1428 = vmatpush1.msra.mxu0 %v174_v19  ;;  %v363_v18 = vld [vmem:[#allocation5 + $0x9b0] sm:$0xff]  ;;  %v58_v19 = vld [vmem:[#allocation5 + $0x28] sm:$0xff] }
  0xf2   :  { %1497 = vmatpush1.msra.mxu1 %v471_v20  ;;  %1429 = vmatprep.subr.mxu0 %v166_v21  ;;  %v355_v20 = vld [vmem:[#allocation5 + $0x970] sm:$0xff]  ;;  %v57_v21 = vld [vmem:[#allocation5 + $0x20] sm:$0xff] }
  0xf3   :  { %1498 = vmatprep.subr.mxu1 %v463_v23  ;;  %1430 = vmatpush1.msra.mxu0 %v165_v24  ;;  %v354_v23 = vld [vmem:[#allocation5 + $0x968] sm:$0xff]  ;;  %v337_v24 = vld [vmem:[#allocation5 + $0x8e0] sm:$0xff] }
  0xf4   :  { %1499 = vmatpush1.msra.mxu1 %v462_v26  ;;  %1431 = vmatprep.subr.mxu0 %v157_v27  ;;  %v346_v26 = vld [vmem:[#allocation5 + $0x928] sm:$0xff]  ;;  %v336_v27 = vld [vmem:[#allocation5 + $0x8d8] sm:$0xff] }
  0xf5   :  { %1500 = vmatprep.subr.mxu1 %v454_v28  ;;  %1432 = vmatpush1.msra.mxu0 %v156_v29  ;;  %v345_v28 = vld [vmem:[#allocation5 + $0x920] sm:$0xff]  ;;  %v328_v29 = vld [vmem:[#allocation5 + $0x898] sm:$0xff] }
  0xf6   :  { %1501 = vmatpush1.msra.mxu1 %v453_v30  ;;  %1433 = vmatprep.subr.mxu0 %v148_v31  ;;  %v625_v30 = vld [vmem:[#allocation5 + $0x11e0] sm:$0xff]  ;;  %v327_v31 = vld [vmem:[#allocation5 + $0x890] sm:$0xff] }
  0xf7   :  { %1502 = vmatprep.subr.mxu1 %v445_v33  ;;  %1434 = vmatpush1.msra.mxu0 %v147_v36  ;;  %v624_v33 = vld [vmem:[#allocation5 + $0x11d8] sm:$0xff]  ;;  %v319_v36 = vld [vmem:[#allocation5 + $0x850] sm:$0xff] }
  0xf8   :  { %1503 = vmatpush1.msra.mxu1 %v444_v37  ;;  %1435 = vmatprep.subr.mxu0 %v139_v38  ;;  %v616_v37 = vld [vmem:[#allocation5 + $0x1198] sm:$0xff]  ;;  %v318_v38 = vld [vmem:[#allocation5 + $0x848] sm:$0xff] }
  0xf9   :  { %1504 = vmatprep.subr.mxu1 %v436_v39  ;;  %1436 = vmatpush1.msra.mxu0 %v138_v40  ;;  %v615_v39 = vld [vmem:[#allocation5 + $0x1190] sm:$0xff]  ;;  %v310_v40 = vld [vmem:[#allocation5 + $0x808] sm:$0xff] }
  0xfa   :  { %1505 = vmatpush1.msra.mxu1 %v435_v41  ;;  %1437 = vmatprep.subr.mxu0 %v130_v56  ;;  %v607_v41 = vld [vmem:[#allocation5 + $0x1150] sm:$0xff]  ;;  %v309_v56 = vld [vmem:[#allocation5 + $0x800] sm:$0xff] }
  0xfb   :  { %1506 = vmatprep.subr.mxu1 %v427_v42  ;;  %1438 = vmatpush1.msra.mxu0 %v129_v43  ;;  %v606_v42 = vld [vmem:[#allocation5 + $0x1148] sm:$0xff]  ;;  %v301_v43 = vld [vmem:[#allocation5 + $0x7c0] sm:$0xff] }
  0xfc   :  { %1507 = vmatpush1.msra.mxu1 %v426_v45  ;;  %1439 = vmatprep.subr.mxu0 %v121_v46  ;;  %v598_v45 = vld [vmem:[#allocation5 + $0x1108] sm:$0xff]  ;;  %v300_v46 = vld [vmem:[#allocation5 + $0x7b8] sm:$0xff] }
  0xfd   :  { %1508 = vmatprep.subr.mxu1 %v418_v47  ;;  %1440 = vmatpush1.msra.mxu0 %v120_v48  ;;  %v597_v47 = vld [vmem:[#allocation5 + $0x1100] sm:$0xff]  ;;  %v292_v48 = vld [vmem:[#allocation5 + $0x778] sm:$0xff] }
  0xfe   :  { %1509 = vmatpush1.msra.mxu1 %v417_v49  ;;  %1441 = vmatprep.subr.mxu0 %v112_v50  ;;  %v589_v49 = vld [vmem:[#allocation5 + $0x10c0] sm:$0xff]  ;;  %v291_v50 = vld [vmem:[#allocation5 + $0x770] sm:$0xff] }
  0xff   :  { %1510 = vmatprep.subr.mxu1 %v409_v51  ;;  %1442 = vmatpush1.msra.mxu0 %v111_v52  ;;  %v588_v51 = vld [vmem:[#allocation5 + $0x10b8] sm:$0xff]  ;;  %v283_v52 = vld [vmem:[#allocation5 + $0x730] sm:$0xff] }
 0x100   :  { %1511 = vmatpush1.msra.mxu1 %v408_v54  ;;  %1443 = vmatprep.subr.mxu0 %v103_v55  ;;  %v580_v54 = vld [vmem:[#allocation5 + $0x1078] sm:$0xff]  ;;  %v282_v55 = vld [vmem:[#allocation5 + $0x728] sm:$0xff] }
 0x101   :  { %1512 = vmatprep.subr.mxu1 %v400_v57  ;;  %1444 = vmatpush1.msra.mxu0 %v102_v58  ;;  %v579_v57 = vld [vmem:[#allocation5 + $0x1070] sm:$0xff]  ;;  %v274_v58 = vld [vmem:[#allocation5 + $0x6e8] sm:$0xff] }
 0x102   :  { %1513 = vmatpush1.msra.mxu1 %v399_v60  ;;  %1445 = vmatprep.subr.mxu0 %v94_v61  ;;  %v571_v60 = vld [vmem:[#allocation5 + $0x1030] sm:$0xff]  ;;  %v273_v61 = vld [vmem:[#allocation5 + $0x6e0] sm:$0xff] }
 0x103   :  { %1514 = vmatprep.subr.mxu1 %v391_v62  ;;  %1446 = vmatpush1.msra.mxu0 %v93_v63  ;;  %v570_v62 = vld [vmem:[#allocation5 + $0x1028] sm:$0xff]  ;;  %v265_v63 = vld [vmem:[#allocation5 + $0x6a0] sm:$0xff] }
 0x104   :  { %1515 = vmatpush1.msra.mxu1 %v390_v2  ;;  %1447 = vmatprep.subr.mxu0 %v85_v4  ;;  %v562_v2 = vld [vmem:[#allocation5 + $0xfe8] sm:$0xff]  ;;  %v264_v4 = vld [vmem:[#allocation5 + $0x698] sm:$0xff] }
 0x105   :  { %1516 = vmatprep.subr.mxu1 %v382_v5  ;;  %1448 = vmatpush1.msra.mxu0 %v84_v7  ;;  %v561_v5 = vld [vmem:[#allocation5 + $0xfe0] sm:$0xff]  ;;  %v256_v7 = vld [vmem:[#allocation5 + $0x658] sm:$0xff] }
 0x106   :  { %1517 = vmatpush1.msra.mxu1 %v381_v8  ;;  %1449 = vmatprep.subr.mxu0 %v76_v9  ;;  %v553_v8 = vld [vmem:[#allocation5 + $0xfa0] sm:$0xff]  ;;  %v255_v9 = vld [vmem:[#allocation5 + $0x650] sm:$0xff] }
 0x107   :  { %1518 = vmatprep.subr.mxu1 %v373_v11  ;;  %1450 = vmatpush1.msra.mxu0 %v75_v13  ;;  %v552_v11 = vld [vmem:[#allocation5 + $0xf98] sm:$0xff]  ;;  %v247_v13 = vld [vmem:[#allocation5 + $0x610] sm:$0xff] }
 0x108   :  { %1519 = vmatpush1.msra.mxu1 %v372_v14  ;;  %1451 = vmatprep.subr.mxu0 %v67_v15  ;;  %v544_v14 = vld [vmem:[#allocation5 + $0xf58] sm:$0xff]  ;;  %v246_v15 = vld [vmem:[#allocation5 + $0x608] sm:$0xff] }
 0x109   :  { %1520 = vmatprep.subr.mxu1 %v364_v16  ;;  %1452 = vmatpush1.msra.mxu0 %v66_v17  ;;  %v543_v16 = vld [vmem:[#allocation5 + $0xf50] sm:$0xff]  ;;  %v238_v17 = vld [vmem:[#allocation5 + $0x5c8] sm:$0xff] }
 0x10a   :  { %1521 = vmatpush1.msra.mxu1 %v363_v18  ;;  %1453 = vmatprep.subr.mxu0 %v58_v19  ;;  %v535_v18 = vld [vmem:[#allocation5 + $0xf10] sm:$0xff]  ;;  %v237_v19 = vld [vmem:[#allocation5 + $0x5c0] sm:$0xff] }
 0x10b   :  { %1522 = vmatprep.subr.mxu1 %v355_v20  ;;  %1454 = vmatpush1.msra.mxu0 %v57_v21  ;;  %v534_v20 = vld [vmem:[#allocation5 + $0xf08] sm:$0xff]  ;;  %v229_v21 = vld [vmem:[#allocation5 + $0x580] sm:$0xff] }
 0x10c   :  { %1523 = vmatpush1.msra.mxu1 %v354_v23  ;;  %1455 = vmatprep.subr.mxu0 %v337_v24  ;;  %v526_v23 = vld [vmem:[#allocation5 + $0xec8] sm:$0xff]  ;;  %v228_v24 = vld [vmem:[#allocation5 + $0x578] sm:$0xff] }
 0x10d   :  { %1524 = vmatprep.subr.mxu1 %v346_v26  ;;  %1456 = vmatpush2.msra.mxu0 %v336_v27  ;;  %v525_v26 = vld [vmem:[#allocation5 + $0xec0] sm:$0xff]  ;;  %v220_v27 = vld [vmem:[#allocation5 + $0x538] sm:$0xff] }
 0x10e   :  { %1525 = vmatpush1.msra.mxu1 %v345_v28  ;;  %1457 = vmatprep.subr.mxu0 %v328_v29  ;;  %v517_v28 = vld [vmem:[#allocation5 + $0xe80] sm:$0xff]  ;;  %v219_v29 = vld [vmem:[#allocation5 + $0x530] sm:$0xff] }
 0x10f   :  { %1526 = vmatprep.subr.mxu1 %v625_v30  ;;  %1458 = vmatpush2.msra.mxu0 %v327_v31  ;;  %v516_v30 = vld [vmem:[#allocation5 + $0xe78] sm:$0xff]  ;;  %v211_v31 = vld [vmem:[#allocation5 + $0x4f0] sm:$0xff] }
 0x110   :  { %1527 = vmatpush2.msra.mxu1 %v624_v33  ;;  %1459 = vmatprep.subr.mxu0 %v319_v36  ;;  %v508_v33 = vld [vmem:[#allocation5 + $0xe38] sm:$0xff]  ;;  %v210_v36 = vld [vmem:[#allocation5 + $0x4e8] sm:$0xff] }
 0x111   :  { %1528 = vmatprep.subr.mxu1 %v616_v37  ;;  %1460 = vmatpush2.msra.mxu0 %v318_v38  ;;  %v507_v37 = vld [vmem:[#allocation5 + $0xe30] sm:$0xff]  ;;  %v202_v38 = vld [vmem:[#allocation5 + $0x4a8] sm:$0xff] }
 0x112   :  { %1529 = vmatpush2.msra.mxu1 %v615_v39  ;;  %1461 = vmatprep.subr.mxu0 %v310_v40  ;;  %v499_v39 = vld [vmem:[#allocation5 + $0xdf0] sm:$0xff]  ;;  %v201_v40 = vld [vmem:[#allocation5 + $0x4a0] sm:$0xff] }
 0x113   :  { %1530 = vmatprep.subr.mxu1 %v607_v41  ;;  %1462 = vmatpush2.msra.mxu0 %v309_v56  ;;  %v498_v41 = vld [vmem:[#allocation5 + $0xde8] sm:$0xff] }
 0x114   :  { %1531 = vmatpush2.msra.mxu1 %v606_v42  ;;  %1463 = vmatprep.subr.mxu0 %v301_v43  ;;  %v490_v56 = vld [vmem:[#allocation5 + $0xda8] sm:$0xff]  ;;  %v769_v42 = vld [vmem:[#allocation5 + $0x1660] sm:$0xff] }
 0x115   :  { %1532 = vmatprep.subr.mxu1 %v598_v45  ;;  %1464 = vmatpush2.msra.mxu0 %v300_v46  ;;  %v489_v43 = vld [vmem:[#allocation5 + $0xda0] sm:$0xff]  ;;  %v768_v45 = vld [vmem:[#allocation5 + $0x1658] sm:$0xff] }
 0x116   :  { %1533 = vmatpush2.msra.mxu1 %v597_v47  ;;  %1465 = vmatprep.subr.mxu0 %v292_v48  ;;  %v760_v46 = vld [vmem:[#allocation5 + $0x1618] sm:$0xff]  ;;  %v195_v47 = vld [vmem:[#allocation5 + $0x470] sm:$0xff] }
 0x117   :  { %1534 = vmatprep.subr.mxu1 %v589_v49  ;;  %1466 = vmatpush2.msra.mxu0 %v291_v50  ;;  %v759_v48 = vld [vmem:[#allocation5 + $0x1610] sm:$0xff]  ;;  %v194_v49 = vld [vmem:[#allocation5 + $0x468] sm:$0xff] }
 0x118   :  { %1535 = vmatpush2.msra.mxu1 %v588_v51  ;;  %1467 = vmatprep.subr.mxu0 %v283_v52  ;;  %v751_v50 = vld [vmem:[#allocation5 + $0x15d0] sm:$0xff]  ;;  %v186_v51 = vld [vmem:[#allocation5 + $0x428] sm:$0xff] }
 0x119   :  { %1536 = vmatprep.subr.mxu1 %v580_v54  ;;  %1468 = vmatpush2.msra.mxu0 %v282_v55  ;;  %v750_v52 = vld [vmem:[#allocation5 + $0x15c8] sm:$0xff]  ;;  %v185_v54 = vld [vmem:[#allocation5 + $0x420] sm:$0xff] }
 0x11a   :  { %1537 = vmatpush2.msra.mxu1 %v579_v57  ;;  %1469 = vmatprep.subr.mxu0 %v274_v58  ;;  %v742_v55 = vld [vmem:[#allocation5 + $0x1588] sm:$0xff]  ;;  %v177_v57 = vld [vmem:[#allocation5 + $0x3e0] sm:$0xff] }
 0x11b   :  { %1538 = vmatprep.subr.mxu1 %v571_v60  ;;  %1470 = vmatpush2.msra.mxu0 %v273_v61  ;;  %v741_v58 = vld [vmem:[#allocation5 + $0x1580] sm:$0xff]  ;;  %v176_v60 = vld [vmem:[#allocation5 + $0x3d8] sm:$0xff] }
 0x11c   :  { %1539 = vmatpush2.msra.mxu1 %v570_v62  ;;  %1471 = vmatprep.subr.mxu0 %v265_v63  ;;  %v733_v61 = vld [vmem:[#allocation5 + $0x1540] sm:$0xff]  ;;  %v168_v62 = vld [vmem:[#allocation5 + $0x398] sm:$0xff] }
 0x11d   :  { %1540 = vmatprep.subr.mxu1 %v562_v2  ;;  %1472 = vmatpush2.msra.mxu0 %v264_v4  ;;  %v732_v63 = vld [vmem:[#allocation5 + $0x1538] sm:$0xff]  ;;  %v167_v2 = vld [vmem:[#allocation5 + $0x390] sm:$0xff] }
 0x11e   :  { %1541 = vmatpush2.msra.mxu1 %v561_v5  ;;  %1473 = vmatprep.subr.mxu0 %v256_v7  ;;  %v724_v4 = vld [vmem:[#allocation5 + $0x14f8] sm:$0xff]  ;;  %v159_v5 = vld [vmem:[#allocation5 + $0x350] sm:$0xff] }
 0x11f   :  { %1542 = vmatprep.subr.mxu1 %v553_v8  ;;  %1474 = vmatpush2.msra.mxu0 %v255_v9  ;;  %v723_v7 = vld [vmem:[#allocation5 + $0x14f0] sm:$0xff]  ;;  %v158_v8 = vld [vmem:[#allocation5 + $0x348] sm:$0xff] }
 0x120   :  { %1543 = vmatpush2.msra.mxu1 %v552_v11  ;;  %1475 = vmatprep.subr.mxu0 %v247_v13  ;;  %v715_v9 = vld [vmem:[#allocation5 + $0x14b0] sm:$0xff]  ;;  %v150_v11 = vld [vmem:[#allocation5 + $0x308] sm:$0xff] }
 0x121   :  { %1544 = vmatprep.subr.mxu1 %v544_v14  ;;  %1476 = vmatpush2.msra.mxu0 %v246_v15  ;;  %v714_v13 = vld [vmem:[#allocation5 + $0x14a8] sm:$0xff]  ;;  %v149_v14 = vld [vmem:[#allocation5 + $0x300] sm:$0xff] }
 0x122   :  { %1545 = vmatpush2.msra.mxu1 %v543_v16  ;;  %1477 = vmatprep.subr.mxu0 %v238_v17  ;;  %v706_v15 = vld [vmem:[#allocation5 + $0x1468] sm:$0xff]  ;;  %v141_v16 = vld [vmem:[#allocation5 + $0x2c0] sm:$0xff] }
 0x123   :  { %1546 = vmatprep.subr.mxu1 %v535_v18  ;;  %1478 = vmatpush2.msra.mxu0 %v237_v19  ;;  %v705_v17 = vld [vmem:[#allocation5 + $0x1460] sm:$0xff]  ;;  %v140_v18 = vld [vmem:[#allocation5 + $0x2b8] sm:$0xff] }
 0x124   :  { %1547 = vmatpush2.msra.mxu1 %v534_v20  ;;  %1479 = vmatprep.subr.mxu0 %v229_v21  ;;  %v697_v19 = vld [vmem:[#allocation5 + $0x1420] sm:$0xff]  ;;  %v132_v20 = vld [vmem:[#allocation5 + $0x278] sm:$0xff] }
 0x125   :  { %1548 = vmatprep.subr.mxu1 %v526_v23  ;;  %1480 = vmatpush2.msra.mxu0 %v228_v24  ;;  %v696_v21 = vld [vmem:[#allocation5 + $0x1418] sm:$0xff]  ;;  %v131_v23 = vld [vmem:[#allocation5 + $0x270] sm:$0xff] }
 0x126   :  { %1549 = vmatpush2.msra.mxu1 %v525_v26  ;;  %1481 = vmatprep.subr.mxu0 %v220_v27  ;;  %v688_v24 = vld [vmem:[#allocation5 + $0x13d8] sm:$0xff]  ;;  %v123_v26 = vld [vmem:[#allocation5 + $0x230] sm:$0xff] }
 0x127   :  { %1550 = vmatprep.subr.mxu1 %v517_v28  ;;  %1482 = vmatpush2.msra.mxu0 %v219_v29  ;;  %v687_v27 = vld [vmem:[#allocation5 + $0x13d0] sm:$0xff]  ;;  %v122_v28 = vld [vmem:[#allocation5 + $0x228] sm:$0xff] }
 0x128   :  { %1551 = vmatpush2.msra.mxu1 %v516_v30  ;;  %1483 = vmatprep.subr.mxu0 %v211_v31  ;;  %v679_v29 = vld [vmem:[#allocation5 + $0x1390] sm:$0xff]  ;;  %v114_v30 = vld [vmem:[#allocation5 + $0x1e8] sm:$0xff] }
 0x129   :  { %1552 = vmatprep.subr.mxu1 %v508_v33  ;;  %1484 = vmatpush2.msra.mxu0 %v210_v36  ;;  %v678_v31 = vld [vmem:[#allocation5 + $0x1388] sm:$0xff]  ;;  %v113_v33 = vld [vmem:[#allocation5 + $0x1e0] sm:$0xff] }
 0x12a   :  { %1553 = vmatpush2.msra.mxu1 %v507_v37  ;;  %1485 = vmatprep.subr.mxu0 %v202_v38  ;;  %v670_v36 = vld [vmem:[#allocation5 + $0x1348] sm:$0xff]  ;;  %v105_v37 = vld [vmem:[#allocation5 + $0x1a0] sm:$0xff] }
 0x12b   :  { %1554 = vmatprep.subr.mxu1 %v499_v39  ;;  %1486 = vmatpush2.msra.mxu0 %v201_v40  ;;  %v669_v38 = vld [vmem:[#allocation5 + $0x1340] sm:$0xff]  ;;  %v104_v39 = vld [vmem:[#allocation5 + $0x198] sm:$0xff] }
 0x12c   :  { %1487 = vmatprep.mubr.f32.mxu0 %v2400_v0  ;;  %1555 = vmatpush2.msra.mxu1 %v498_v41  ;;  %v661_v40 = vld [vmem:[#allocation5 + $0x1300] sm:$0xff]  ;;  %v96_v41 = vld [vmem:[#allocation5 + $0x158] sm:$0xff] }
 0x12d   :  { %1488 = vmatmul.mubr.f32.vlgmr.msra.gmra.mxu0 %v2407_v6  ;;  %1556 = vmatprep.subr.mxu1 %v490_v56  ;;  %v660_v56 = vld [vmem:[#allocation5 + $0x12f8] sm:$0xff] }
 0x12e   :  { %1565 = vmatprep.subr.mxu0 %v769_v42  ;;  %1557 = vmatpush2.msra.mxu1 %v489_v43  ;;  %v95_v42 = vld [vmem:[#allocation5 + $0x150] sm:$0xff]  ;;  %v652_v43 = vld [vmem:[#allocation5 + $0x12b8] sm:$0xff] }
 0x12f   :  { %1558 = vmatprep.mubr.f32.mxu1 %v2413_v10  ;;  %1566 = vmatpush1.msra.mxu0 %v768_v45  ;;  %v87_v45 = vld [vmem:[#allocation5 + $0x110] sm:$0xff] }
 0x130   :  { %1559 = vmatmul.mubr.f32.vlgmr.msra.gmra.mxu1 %v2418_v12  ;;  %1567 = vmatprep.subr.mxu0 %v760_v46  ;;  %v651_v46 = vld [vmem:[#allocation5 + $0x12b0] sm:$0xff] }
 0x131   :  { %1636 = vmatprep.subr.mxu1 %v195_v47  ;;  %1568 = vmatpush1.msra.mxu0 %v759_v48  ;;  %v86_v47 = vld [vmem:[#allocation5 + $0x108] sm:$0xff]  ;;  %v643_v48 = vld [vmem:[#allocation5 + $0x1270] sm:$0xff] }
 0x132   :  { %1637 = vmatpush1.msra.mxu1 %v194_v49  ;;  %1569 = vmatprep.subr.mxu0 %v751_v50  ;;  %v78_v49 = vld [vmem:[#allocation5 + $0xc8] sm:$0xff] }
 0x133   :  { %1638 = vmatprep.subr.mxu1 %v186_v51  ;;  %1570 = vmatpush1.msra.mxu0 %v750_v52  ;;  %v642_v50 = vld [vmem:[#allocation5 + $0x1268] sm:$0xff]  ;;  %v77_v51 = vld [vmem:[#allocation5 + $0xc0] sm:$0xff] }
 0x134   :  { %1639 = vmatpush1.msra.mxu1 %v185_v54  ;;  %1571 = vmatprep.subr.mxu0 %v742_v55  ;;  %v634_v52 = vld [vmem:[#allocation5 + $0x1228] sm:$0xff]  ;;  %v69_v54 = vld [vmem:[#allocation5 + $0x80] sm:$0xff] }
 0x135   :  { %1640 = vmatprep.subr.mxu1 %v177_v57  ;;  %1572 = vmatpush1.msra.mxu0 %v741_v58  ;;  %v633_v55 = vld [vmem:[#allocation5 + $0x1220] sm:$0xff]  ;;  %v68_v57 = vld [vmem:[#allocation5 + $0x78] sm:$0xff] }
 0x136   :  { %1641 = vmatpush1.msra.mxu1 %v176_v60  ;;  %1573 = vmatprep.subr.mxu0 %v733_v61  ;;  %v913_v58 = vld [vmem:[#allocation5 + $0x1ae0] sm:$0xff]  ;;  %v60_v60 = vld [vmem:[#allocation5 + $0x38] sm:$0xff] }
 0x137   :  { %1642 = vmatprep.subr.mxu1 %v168_v62  ;;  %1574 = vmatpush1.msra.mxu0 %v732_v63  ;;  %v912_v61 = vld [vmem:[#allocation5 + $0x1ad8] sm:$0xff]  ;;  %v59_v62 = vld [vmem:[#allocation5 + $0x30] sm:$0xff] }
 0x138   :  { %1643 = vmatpush1.msra.mxu1 %v167_v2  ;;  %1575 = vmatprep.subr.mxu0 %v724_v4  ;;  %v904_v63 = vld [vmem:[#allocation5 + $0x1a98] sm:$0xff]  ;;  %v339_v2 = vld [vmem:[#allocation5 + $0x8f0] sm:$0xff] }
 0x139   :  { %1644 = vmatprep.subr.mxu1 %v159_v5  ;;  %1576 = vmatpush1.msra.mxu0 %v723_v7  ;;  %v903_v4 = vld [vmem:[#allocation5 + $0x1a90] sm:$0xff]  ;;  %v338_v5 = vld [vmem:[#allocation5 + $0x8e8] sm:$0xff] }
 0x13a   :  { %1645 = vmatpush1.msra.mxu1 %v158_v8  ;;  %1577 = vmatprep.subr.mxu0 %v715_v9  ;;  %v895_v7 = vld [vmem:[#allocation5 + $0x1a50] sm:$0xff]  ;;  %v330_v8 = vld [vmem:[#allocation5 + $0x8a8] sm:$0xff] }
 0x13b   :  { %1646 = vmatprep.subr.mxu1 %v150_v11  ;;  %1578 = vmatpush1.msra.mxu0 %v714_v13  ;;  %v894_v9 = vld [vmem:[#allocation5 + $0x1a48] sm:$0xff]  ;;  %v329_v11 = vld [vmem:[#allocation5 + $0x8a0] sm:$0xff] }
 0x13c   :  { %1647 = vmatpush1.msra.mxu1 %v149_v14  ;;  %1579 = vmatprep.subr.mxu0 %v706_v15  ;;  %v886_v13 = vld [vmem:[#allocation5 + $0x1a08] sm:$0xff]  ;;  %v321_v14 = vld [vmem:[#allocation5 + $0x860] sm:$0xff] }
 0x13d   :  { %1648 = vmatprep.subr.mxu1 %v141_v16  ;;  %1580 = vmatpush1.msra.mxu0 %v705_v17  ;;  %v885_v15 = vld [vmem:[#allocation5 + $0x1a00] sm:$0xff]  ;;  %v320_v16 = vld [vmem:[#allocation5 + $0x858] sm:$0xff] }
 0x13e   :  { %1649 = vmatpush1.msra.mxu1 %v140_v18  ;;  %1581 = vmatprep.subr.mxu0 %v697_v19  ;;  %v877_v17 = vld [vmem:[#allocation5 + $0x19c0] sm:$0xff]  ;;  %v312_v18 = vld [vmem:[#allocation5 + $0x818] sm:$0xff] }
 0x13f   :  { %1650 = vmatprep.subr.mxu1 %v132_v20  ;;  %1582 = vmatpush1.msra.mxu0 %v696_v21  ;;  %v876_v19 = vld [vmem:[#allocation5 + $0x19b8] sm:$0xff]  ;;  %v311_v20 = vld [vmem:[#allocation5 + $0x810] sm:$0xff] }
 0x140   :  { %1651 = vmatpush1.msra.mxu1 %v131_v23  ;;  %1583 = vmatprep.subr.mxu0 %v688_v24  ;;  %v868_v21 = vld [vmem:[#allocation5 + $0x1978] sm:$0xff]  ;;  %v303_v23 = vld [vmem:[#allocation5 + $0x7d0] sm:$0xff] }
 0x141   :  { %1652 = vmatprep.subr.mxu1 %v123_v26  ;;  %1584 = vmatpush1.msra.mxu0 %v687_v27  ;;  %v867_v24 = vld [vmem:[#allocation5 + $0x1970] sm:$0xff]  ;;  %v302_v26 = vld [vmem:[#allocation5 + $0x7c8] sm:$0xff] }
 0x142   :  { %1653 = vmatpush1.msra.mxu1 %v122_v28  ;;  %1585 = vmatprep.subr.mxu0 %v679_v29  ;;  %v859_v27 = vld [vmem:[#allocation5 + $0x1930] sm:$0xff]  ;;  %v294_v28 = vld [vmem:[#allocation5 + $0x788] sm:$0xff] }
 0x143   :  { %1654 = vmatprep.subr.mxu1 %v114_v30  ;;  %1586 = vmatpush1.msra.mxu0 %v678_v31  ;;  %v858_v29 = vld [vmem:[#allocation5 + $0x1928] sm:$0xff]  ;;  %v293_v30 = vld [vmem:[#allocation5 + $0x780] sm:$0xff] }
 0x144   :  { %1655 = vmatpush1.msra.mxu1 %v113_v33  ;;  %1587 = vmatprep.subr.mxu0 %v670_v36  ;;  %v850_v31 = vld [vmem:[#allocation5 + $0x18e8] sm:$0xff]  ;;  %v285_v33 = vld [vmem:[#allocation5 + $0x740] sm:$0xff] }
 0x145   :  { %1656 = vmatprep.subr.mxu1 %v105_v37  ;;  %1588 = vmatpush1.msra.mxu0 %v669_v38  ;;  %v849_v36 = vld [vmem:[#allocation5 + $0x18e0] sm:$0xff]  ;;  %v284_v37 = vld [vmem:[#allocation5 + $0x738] sm:$0xff] }
 0x146   :  { %1657 = vmatpush1.msra.mxu1 %v104_v39  ;;  %1589 = vmatprep.subr.mxu0 %v661_v40  ;;  %v841_v38 = vld [vmem:[#allocation5 + $0x18a0] sm:$0xff]  ;;  %v276_v39 = vld [vmem:[#allocation5 + $0x6f8] sm:$0xff] }
 0x147   :  { %1658 = vmatprep.subr.mxu1 %v96_v41  ;;  %1590 = vmatpush1.msra.mxu0 %v660_v56  ;;  %v840_v40 = vld [vmem:[#allocation5 + $0x1898] sm:$0xff]  ;;  %v275_v41 = vld [vmem:[#allocation5 + $0x6f0] sm:$0xff] }
 0x148   :  { %1659 = vmatpush1.msra.mxu1 %v95_v42  ;;  %1591 = vmatprep.subr.mxu0 %v652_v43  ;;  %v832_v56 = vld [vmem:[#allocation5 + $0x1858] sm:$0xff]  ;;  %v267_v42 = vld [vmem:[#allocation5 + $0x6b0] sm:$0xff] }
 0x149   :  { %1660 = vmatprep.subr.mxu1 %v87_v45  ;;  %1592 = vmatpush1.msra.mxu0 %v651_v46  ;;  %v831_v43 = vld [vmem:[#allocation5 + $0x1850] sm:$0xff]  ;;  %v266_v45 = vld [vmem:[#allocation5 + $0x6a8] sm:$0xff] }
 0x14a   :  { %1661 = vmatpush1.msra.mxu1 %v86_v47  ;;  %1593 = vmatprep.subr.mxu0 %v643_v48  ;;  %v823_v46 = vld [vmem:[#allocation5 + $0x1810] sm:$0xff]  ;;  %v258_v47 = vld [vmem:[#allocation5 + $0x668] sm:$0xff] }
 0x14b   :  { %1662 = vmatprep.subr.mxu1 %v78_v49  ;;  %1594 = vmatpush1.msra.mxu0 %v642_v50  ;;  %v822_v48 = vld [vmem:[#allocation5 + $0x1808] sm:$0xff]  ;;  %v257_v49 = vld [vmem:[#allocation5 + $0x660] sm:$0xff] }
 0x14c   :  { %1663 = vmatpush1.msra.mxu1 %v77_v51  ;;  %1595 = vmatprep.subr.mxu0 %v634_v52  ;;  %v814_v50 = vld [vmem:[#allocation5 + $0x17c8] sm:$0xff]  ;;  %v249_v51 = vld [vmem:[#allocation5 + $0x620] sm:$0xff] }
 0x14d   :  { %1664 = vmatprep.subr.mxu1 %v69_v54  ;;  %1596 = vmatpush1.msra.mxu0 %v633_v55  ;;  %v813_v52 = vld [vmem:[#allocation5 + $0x17c0] sm:$0xff]  ;;  %v248_v54 = vld [vmem:[#allocation5 + $0x618] sm:$0xff] }
 0x14e   :  { %1665 = vmatpush1.msra.mxu1 %v68_v57  ;;  %1597 = vmatprep.subr.mxu0 %v913_v58  ;;  %v805_v55 = vld [vmem:[#allocation5 + $0x1780] sm:$0xff]  ;;  %v240_v57 = vld [vmem:[#allocation5 + $0x5d8] sm:$0xff] }
 0x14f   :  { %1666 = vmatprep.subr.mxu1 %v60_v60  ;;  %1598 = vmatpush2.msra.mxu0 %v912_v61  ;;  %v804_v58 = vld [vmem:[#allocation5 + $0x1778] sm:$0xff]  ;;  %v239_v60 = vld [vmem:[#allocation5 + $0x5d0] sm:$0xff] }
 0x150   :  { %1667 = vmatpush1.msra.mxu1 %v59_v62  ;;  %1599 = vmatprep.subr.mxu0 %v904_v63  ;;  %v796_v61 = vld [vmem:[#allocation5 + $0x1738] sm:$0xff]  ;;  %v231_v62 = vld [vmem:[#allocation5 + $0x590] sm:$0xff] }
 0x151   :  { %1668 = vmatprep.subr.mxu1 %v339_v2  ;;  %1600 = vmatpush2.msra.mxu0 %v903_v4  ;;  %v795_v63 = vld [vmem:[#allocation5 + $0x1730] sm:$0xff]  ;;  %v230_v2 = vld [vmem:[#allocation5 + $0x588] sm:$0xff] }
 0x152   :  { %1669 = vmatpush2.msra.mxu1 %v338_v5  ;;  %1601 = vmatprep.subr.mxu0 %v895_v7  ;;  %v787_v4 = vld [vmem:[#allocation5 + $0x16f0] sm:$0xff]  ;;  %v222_v5 = vld [vmem:[#allocation5 + $0x548] sm:$0xff] }
 0x153   :  { %1670 = vmatprep.subr.mxu1 %v330_v8  ;;  %1602 = vmatpush2.msra.mxu0 %v894_v9  ;;  %v786_v7 = vld [vmem:[#allocation5 + $0x16e8] sm:$0xff]  ;;  %v221_v8 = vld [vmem:[#allocation5 + $0x540] sm:$0xff] }
 0x154   :  { %1671 = vmatpush2.msra.mxu1 %v329_v11  ;;  %1603 = vmatprep.subr.mxu0 %v886_v13  ;;  %v778_v9 = vld [vmem:[#allocation5 + $0x16a8] sm:$0xff]  ;;  %v213_v11 = vld [vmem:[#allocation5 + $0x500] sm:$0xff] }
 0x155   :  { %1672 = vmatprep.subr.mxu1 %v321_v14  ;;  %1604 = vmatpush2.msra.mxu0 %v885_v15  ;;  %v777_v13 = vld [vmem:[#allocation5 + $0x16a0] sm:$0xff]  ;;  %v212_v14 = vld [vmem:[#allocation5 + $0x4f8] sm:$0xff] }
 0x156   :  { %1673 = vmatpush2.msra.mxu1 %v320_v16  ;;  %1605 = vmatprep.subr.mxu0 %v877_v17  ;;  %v204_v15 = vld [vmem:[#allocation5 + $0x4b8] sm:$0xff]  ;;  %v483_v16 = vld [vmem:[#allocation5 + $0xd70] sm:$0xff] }
 0x157   :  { %1674 = vmatprep.subr.mxu1 %v312_v18  ;;  %1606 = vmatpush2.msra.mxu0 %v876_v19  ;;  %v203_v17 = vld [vmem:[#allocation5 + $0x4b0] sm:$0xff]  ;;  %v482_v18 = vld [vmem:[#allocation5 + $0xd68] sm:$0xff] }
 0x158   :  { %1675 = vmatpush2.msra.mxu1 %v311_v20  ;;  %1607 = vmatprep.subr.mxu0 %v868_v21  ;;  %v474_v19 = vld [vmem:[#allocation5 + $0xd28] sm:$0xff]  ;;  %v771_v20 = vld [vmem:[#allocation5 + $0x1670] sm:$0xff]  ;;  %v473_v21 = vld [vmem:[#allocation5 + $0xd20] sm:$0xff] }
 0x159   :  { %1676 = vmatprep.subr.mxu1 %v303_v23  ;;  %1608 = vmatpush2.msra.mxu0 %v867_v24  ;;  %v770_v23 = vld [vmem:[#allocation5 + $0x1668] sm:$0xff]  ;;  %v465_v24 = vld [vmem:[#allocation5 + $0xce0] sm:$0xff] }
 0x15a   :  { %1677 = vmatpush2.msra.mxu1 %v302_v26  ;;  %1609 = vmatprep.subr.mxu0 %v859_v27  ;;  %v762_v26 = vld [vmem:[#allocation5 + $0x1628] sm:$0xff]  ;;  %v464_v27 = vld [vmem:[#allocation5 + $0xcd8] sm:$0xff] }
 0x15b   :  { %1678 = vmatprep.subr.mxu1 %v294_v28  ;;  %1610 = vmatpush2.msra.mxu0 %v858_v29  ;;  %v761_v28 = vld [vmem:[#allocation5 + $0x1620] sm:$0xff]  ;;  %v456_v29 = vld [vmem:[#allocation5 + $0xc98] sm:$0xff] }
 0x15c   :  { %1679 = vmatpush2.msra.mxu1 %v293_v30  ;;  %1611 = vmatprep.subr.mxu0 %v850_v31  ;;  %v753_v30 = vld [vmem:[#allocation5 + $0x15e0] sm:$0xff]  ;;  %v455_v31 = vld [vmem:[#allocation5 + $0xc90] sm:$0xff] }
 0x15d   :  { %1680 = vmatprep.subr.mxu1 %v285_v33  ;;  %1612 = vmatpush2.msra.mxu0 %v849_v36  ;;  %v752_v33 = vld [vmem:[#allocation5 + $0x15d8] sm:$0xff]  ;;  %v447_v36 = vld [vmem:[#allocation5 + $0xc50] sm:$0xff] }
 0x15e   :  { %1681 = vmatpush2.msra.mxu1 %v284_v37  ;;  %1613 = vmatprep.subr.mxu0 %v841_v38  ;;  %v744_v37 = vld [vmem:[#allocation5 + $0x1598] sm:$0xff]  ;;  %v446_v38 = vld [vmem:[#allocation5 + $0xc48] sm:$0xff] }
 0x15f   :  { %1682 = vmatprep.subr.mxu1 %v276_v39  ;;  %1614 = vmatpush2.msra.mxu0 %v840_v40  ;;  %v743_v39 = vld [vmem:[#allocation5 + $0x1590] sm:$0xff]  ;;  %v438_v40 = vld [vmem:[#allocation5 + $0xc08] sm:$0xff] }
 0x160   :  { %1683 = vmatpush2.msra.mxu1 %v275_v41  ;;  %1615 = vmatprep.subr.mxu0 %v832_v56  ;;  %v735_v41 = vld [vmem:[#allocation5 + $0x1550] sm:$0xff]  ;;  %v437_v56 = vld [vmem:[#allocation5 + $0xc00] sm:$0xff] }
 0x161   :  { %1684 = vmatprep.subr.mxu1 %v267_v42  ;;  %1616 = vmatpush2.msra.mxu0 %v831_v43  ;;  %v734_v42 = vld [vmem:[#allocation5 + $0x1548] sm:$0xff]  ;;  %v429_v43 = vld [vmem:[#allocation5 + $0xbc0] sm:$0xff] }
 0x162   :  { %1685 = vmatpush2.msra.mxu1 %v266_v45  ;;  %1617 = vmatprep.subr.mxu0 %v823_v46  ;;  %v726_v45 = vld [vmem:[#allocation5 + $0x1508] sm:$0xff]  ;;  %v428_v46 = vld [vmem:[#allocation5 + $0xbb8] sm:$0xff] }
 0x163   :  { %1686 = vmatprep.subr.mxu1 %v258_v47  ;;  %1618 = vmatpush2.msra.mxu0 %v822_v48  ;;  %v725_v47 = vld [vmem:[#allocation5 + $0x1500] sm:$0xff]  ;;  %v420_v48 = vld [vmem:[#allocation5 + $0xb78] sm:$0xff] }
 0x164   :  { %1687 = vmatpush2.msra.mxu1 %v257_v49  ;;  %1619 = vmatprep.subr.mxu0 %v814_v50  ;;  %v717_v49 = vld [vmem:[#allocation5 + $0x14c0] sm:$0xff]  ;;  %v419_v50 = vld [vmem:[#allocation5 + $0xb70] sm:$0xff] }
 0x165   :  { %1688 = vmatprep.subr.mxu1 %v249_v51  ;;  %1620 = vmatpush2.msra.mxu0 %v813_v52  ;;  %v716_v51 = vld [vmem:[#allocation5 + $0x14b8] sm:$0xff]  ;;  %v411_v52 = vld [vmem:[#allocation5 + $0xb30] sm:$0xff] }
 0x166   :  { %1689 = vmatpush2.msra.mxu1 %v248_v54  ;;  %1621 = vmatprep.subr.mxu0 %v805_v55  ;;  %v708_v54 = vld [vmem:[#allocation5 + $0x1478] sm:$0xff]  ;;  %v410_v55 = vld [vmem:[#allocation5 + $0xb28] sm:$0xff] }
 0x167   :  { %1690 = vmatprep.subr.mxu1 %v240_v57  ;;  %1622 = vmatpush2.msra.mxu0 %v804_v58  ;;  %v707_v57 = vld [vmem:[#allocation5 + $0x1470] sm:$0xff]  ;;  %v402_v58 = vld [vmem:[#allocation5 + $0xae8] sm:$0xff] }
 0x168   :  { %1691 = vmatpush2.msra.mxu1 %v239_v60  ;;  %1623 = vmatprep.subr.mxu0 %v796_v61  ;;  %v699_v60 = vld [vmem:[#allocation5 + $0x1430] sm:$0xff]  ;;  %v401_v61 = vld [vmem:[#allocation5 + $0xae0] sm:$0xff] }
 0x169   :  { %1692 = vmatprep.subr.mxu1 %v231_v62  ;;  %1624 = vmatpush2.msra.mxu0 %v795_v63  ;;  %v698_v62 = vld [vmem:[#allocation5 + $0x1428] sm:$0xff]  ;;  %v393_v63 = vld [vmem:[#allocation5 + $0xaa0] sm:$0xff] }
 0x16a   :  { %1693 = vmatpush2.msra.mxu1 %v230_v2  ;;  %1625 = vmatprep.subr.mxu0 %v787_v4  ;;  %v690_v2 = vld [vmem:[#allocation5 + $0x13e8] sm:$0xff]  ;;  %v392_v4 = vld [vmem:[#allocation5 + $0xa98] sm:$0xff] }
 0x16b   :  { %1694 = vmatprep.subr.mxu1 %v222_v5  ;;  %1626 = vmatpush2.msra.mxu0 %v786_v7  ;;  %v689_v5 = vld [vmem:[#allocation5 + $0x13e0] sm:$0xff]  ;;  %v384_v7 = vld [vmem:[#allocation5 + $0xa58] sm:$0xff] }
 0x16c   :  { %1695 = vmatpush2.msra.mxu1 %v221_v8  ;;  %1627 = vmatprep.subr.mxu0 %v778_v9  ;;  %v681_v8 = vld [vmem:[#allocation5 + $0x13a0] sm:$0xff]  ;;  %v383_v9 = vld [vmem:[#allocation5 + $0xa50] sm:$0xff] }
 0x16d   :  { %1696 = vmatprep.subr.mxu1 %v213_v11  ;;  %1628 = vmatpush2.msra.mxu0 %v777_v13  ;;  %v680_v11 = vld [vmem:[#allocation5 + $0x1398] sm:$0xff]  ;;  %v375_v13 = vld [vmem:[#allocation5 + $0xa10] sm:$0xff] }
 0x16e   :  { %1629 = vmatprep.mubr.f32.mxu0 %v2428_v32  ;;  %1697 = vmatpush2.msra.mxu1 %v212_v14  ;;  %v672_v14 = vld [vmem:[#allocation5 + $0x1358] sm:$0xff] }
 0x16f   :  { %1630 = vmatmul.mubr.f32.vlgmr.msra.gmra.mxu0 %v2433_v34  ;;  %1698 = vmatprep.subr.mxu1 %v204_v15  ;;  %v374_v15 = vld [vmem:[#allocation5 + $0xa08] sm:$0xff] }
 0x170   :  { %1707 = vmatprep.subr.mxu0 %v483_v16  ;;  %1699 = vmatpush2.msra.mxu1 %v203_v17  ;;  %v671_v16 = vld [vmem:[#allocation5 + $0x1350] sm:$0xff]  ;;  %v366_v17 = vld [vmem:[#allocation5 + $0x9c8] sm:$0xff] }
 0x171   :  { %1708 = vmatpush1.msra.mxu0 %v482_v18  ;;  %1700 = vmatprep.mubr.f32.mxu1 %v2400_v0  ;;  %v663_v18 = vld [vmem:[#allocation5 + $0x1310] sm:$0xff] }
 0x172   :  { %1709 = vmatprep.subr.mxu0 %v474_v19  ;;  %1778 = vmatprep.subr.mxu1 %v771_v20  ;;  %v365_v19 = vld [vmem:[#allocation5 + $0x9c0] sm:$0xff]  ;;  %v662_v20 = vld [vmem:[#allocation5 + $0x1308] sm:$0xff] }
 0x173   :  { %1701 = vmatmul.mubr.f32.vlgmr.msra.gmra.mxu1 %v2407_v6  ;;  %1710 = vmatpush1.msra.mxu0 %v473_v21  ;;  %v357_v21 = vld [vmem:[#allocation5 + $0x980] sm:$0xff] }
 0x174   :  { %1779 = vmatpush1.msra.mxu1 %v770_v23  ;;  %1711 = vmatprep.subr.mxu0 %v465_v24  ;;  %v654_v23 = vld [vmem:[#allocation5 + $0x12c8] sm:$0xff]  ;;  %v356_v24 = vld [vmem:[#allocation5 + $0x978] sm:$0xff] }
 0x175   :  { %1780 = vmatprep.subr.mxu1 %v762_v26  ;;  %1712 = vmatpush1.msra.mxu0 %v464_v27  ;;  %v653_v26 = vld [vmem:[#allocation5 + $0x12c0] sm:$0xff]  ;;  %v348_v27 = vld [vmem:[#allocation5 + $0x938] sm:$0xff] }
 0x176   :  { %1781 = vmatpush1.msra.mxu1 %v761_v28  ;;  %1713 = vmatprep.subr.mxu0 %v456_v29  ;;  %v645_v28 = vld [vmem:[#allocation5 + $0x1280] sm:$0xff]  ;;  %v347_v29 = vld [vmem:[#allocation5 + $0x930] sm:$0xff] }
 0x177   :  { %1782 = vmatprep.subr.mxu1 %v753_v30  ;;  %1714 = vmatpush1.msra.mxu0 %v455_v31  ;;  %v644_v30 = vld [vmem:[#allocation5 + $0x1278] sm:$0xff]  ;;  %v627_v31 = vld [vmem:[#allocation5 + $0x11f0] sm:$0xff] }
 0x178   :  { %1783 = vmatpush1.msra.mxu1 %v752_v33  ;;  %1715 = vmatprep.subr.mxu0 %v447_v36  ;;  %v636_v33 = vld [vmem:[#allocation5 + $0x1238] sm:$0xff]  ;;  %v626_v36 = vld [vmem:[#allocation5 + $0x11e8] sm:$0xff] }
 0x179   :  { %1784 = vmatprep.subr.mxu1 %v744_v37  ;;  %1716 = vmatpush1.msra.mxu0 %v446_v38  ;;  %v635_v37 = vld [vmem:[#allocation5 + $0x1230] sm:$0xff]  ;;  %v618_v38 = vld [vmem:[#allocation5 + $0x11a8] sm:$0xff] }
 0x17a   :  { %1785 = vmatpush1.msra.mxu1 %v743_v39  ;;  %1717 = vmatprep.subr.mxu0 %v438_v40  ;;  %v915_v39 = vld [vmem:[#allocation5 + $0x1af0] sm:$0xff]  ;;  %v617_v40 = vld [vmem:[#allocation5 + $0x11a0] sm:$0xff] }
 0x17b   :  { %1786 = vmatprep.subr.mxu1 %v735_v41  ;;  %1718 = vmatpush1.msra.mxu0 %v437_v56  ;;  %v914_v41 = vld [vmem:[#allocation5 + $0x1ae8] sm:$0xff]  ;;  %v609_v56 = vld [vmem:[#allocation5 + $0x1160] sm:$0xff] }
 0x17c   :  { %1787 = vmatpush1.msra.mxu1 %v734_v42  ;;  %1719 = vmatprep.subr.mxu0 %v429_v43  ;;  %v906_v42 = vld [vmem:[#allocation5 + $0x1aa8] sm:$0xff]  ;;  %v608_v43 = vld [vmem:[#allocation5 + $0x1158] sm:$0xff] }
 0x17d   :  { %1788 = vmatprep.subr.mxu1 %v726_v45  ;;  %1720 = vmatpush1.msra.mxu0 %v428_v46  ;;  %v905_v45 = vld [vmem:[#allocation5 + $0x1aa0] sm:$0xff]  ;;  %v600_v46 = vld [vmem:[#allocation5 + $0x1118] sm:$0xff] }
 0x17e   :  { %1789 = vmatpush1.msra.mxu1 %v725_v47  ;;  %1721 = vmatprep.subr.mxu0 %v420_v48  ;;  %v897_v47 = vld [vmem:[#allocation5 + $0x1a60] sm:$0xff]  ;;  %v599_v48 = vld [vmem:[#allocation5 + $0x1110] sm:$0xff] }
 0x17f   :  { %1790 = vmatprep.subr.mxu1 %v717_v49  ;;  %1722 = vmatpush1.msra.mxu0 %v419_v50  ;;  %v896_v49 = vld [vmem:[#allocation5 + $0x1a58] sm:$0xff]  ;;  %v591_v50 = vld [vmem:[#allocation5 + $0x10d0] sm:$0xff] }
 0x180   :  { %1791 = vmatpush1.msra.mxu1 %v716_v51  ;;  %1723 = vmatprep.subr.mxu0 %v411_v52  ;;  %v888_v51 = vld [vmem:[#allocation5 + $0x1a18] sm:$0xff]  ;;  %v590_v52 = vld [vmem:[#allocation5 + $0x10c8] sm:$0xff] }
 0x181   :  { %1792 = vmatprep.subr.mxu1 %v708_v54  ;;  %1724 = vmatpush1.msra.mxu0 %v410_v55  ;;  %v887_v54 = vld [vmem:[#allocation5 + $0x1a10] sm:$0xff]  ;;  %v582_v55 = vld [vmem:[#allocation5 + $0x1088] sm:$0xff] }
 0x182   :  { %1793 = vmatpush1.msra.mxu1 %v707_v57  ;;  %1725 = vmatprep.subr.mxu0 %v402_v58  ;;  %v879_v57 = vld [vmem:[#allocation5 + $0x19d0] sm:$0xff]  ;;  %v581_v58 = vld [vmem:[#allocation5 + $0x1080] sm:$0xff] }
 0x183   :  { %1794 = vmatprep.subr.mxu1 %v699_v60  ;;  %1726 = vmatpush1.msra.mxu0 %v401_v61  ;;  %v878_v60 = vld [vmem:[#allocation5 + $0x19c8] sm:$0xff]  ;;  %v573_v61 = vld [vmem:[#allocation5 + $0x1040] sm:$0xff] }
 0x184   :  { %1795 = vmatpush1.msra.mxu1 %v698_v62  ;;  %1727 = vmatprep.subr.mxu0 %v393_v63  ;;  %v870_v62 = vld [vmem:[#allocation5 + $0x1988] sm:$0xff]  ;;  %v572_v63 = vld [vmem:[#allocation5 + $0x1038] sm:$0xff] }
 0x185   :  { %1796 = vmatprep.subr.mxu1 %v690_v2  ;;  %1728 = vmatpush1.msra.mxu0 %v392_v4  ;;  %v869_v2 = vld [vmem:[#allocation5 + $0x1980] sm:$0xff]  ;;  %v564_v4 = vld [vmem:[#allocation5 + $0xff8] sm:$0xff] }
 0x186   :  { %1797 = vmatpush1.msra.mxu1 %v689_v5  ;;  %1729 = vmatprep.subr.mxu0 %v384_v7  ;;  %v861_v5 = vld [vmem:[#allocation5 + $0x1940] sm:$0xff]  ;;  %v563_v7 = vld [vmem:[#allocation5 + $0xff0] sm:$0xff] }
 0x187   :  { %1798 = vmatprep.subr.mxu1 %v681_v8  ;;  %1730 = vmatpush1.msra.mxu0 %v383_v9  ;;  %v860_v8 = vld [vmem:[#allocation5 + $0x1938] sm:$0xff]  ;;  %v555_v9 = vld [vmem:[#allocation5 + $0xfb0] sm:$0xff] }
 0x188   :  { %1799 = vmatpush1.msra.mxu1 %v680_v11  ;;  %1731 = vmatprep.subr.mxu0 %v375_v13  ;;  %v852_v11 = vld [vmem:[#allocation5 + $0x18f8] sm:$0xff]  ;;  %v554_v13 = vld [vmem:[#allocation5 + $0xfa8] sm:$0xff] }
 0x189   :  { %1800 = vmatprep.subr.mxu1 %v672_v14  ;;  %1732 = vmatpush1.msra.mxu0 %v374_v15  ;;  %v851_v14 = vld [vmem:[#allocation5 + $0x18f0] sm:$0xff]  ;;  %v546_v15 = vld [vmem:[#allocation5 + $0xf68] sm:$0xff] }
 0x18a   :  { %1801 = vmatpush1.msra.mxu1 %v671_v16  ;;  %1733 = vmatprep.subr.mxu0 %v366_v17  ;;  %v843_v16 = vld [vmem:[#allocation5 + $0x18b0] sm:$0xff]  ;;  %v545_v17 = vld [vmem:[#allocation5 + $0xf60] sm:$0xff] }
 0x18b   :  { %1802 = vmatprep.subr.mxu1 %v663_v18  ;;  %1734 = vmatpush1.msra.mxu0 %v365_v19  ;;  %v842_v18 = vld [vmem:[#allocation5 + $0x18a8] sm:$0xff]  ;;  %v537_v19 = vld [vmem:[#allocation5 + $0xf20] sm:$0xff] }
 0x18c   :  { %1803 = vmatpush1.msra.mxu1 %v662_v20  ;;  %1735 = vmatprep.subr.mxu0 %v357_v21  ;;  %v834_v20 = vld [vmem:[#allocation5 + $0x1868] sm:$0xff]  ;;  %v536_v21 = vld [vmem:[#allocation5 + $0xf18] sm:$0xff] }
 0x18d   :  { %1804 = vmatprep.subr.mxu1 %v654_v23  ;;  %1736 = vmatpush1.msra.mxu0 %v356_v24  ;;  %v833_v23 = vld [vmem:[#allocation5 + $0x1860] sm:$0xff]  ;;  %v528_v24 = vld [vmem:[#allocation5 + $0xed8] sm:$0xff] }
 0x18e   :  { %1805 = vmatpush1.msra.mxu1 %v653_v26  ;;  %1737 = vmatprep.subr.mxu0 %v348_v27  ;;  %v825_v26 = vld [vmem:[#allocation5 + $0x1820] sm:$0xff]  ;;  %v527_v27 = vld [vmem:[#allocation5 + $0xed0] sm:$0xff] }
 0x18f   :  { %1806 = vmatprep.subr.mxu1 %v645_v28  ;;  %1738 = vmatpush1.msra.mxu0 %v347_v29  ;;  %v824_v28 = vld [vmem:[#allocation5 + $0x1818] sm:$0xff]  ;;  %v519_v29 = vld [vmem:[#allocation5 + $0xe90] sm:$0xff] }
 0x190   :  { %1807 = vmatpush1.msra.mxu1 %v644_v30  ;;  %1739 = vmatprep.subr.mxu0 %v627_v31  ;;  %v816_v30 = vld [vmem:[#allocation5 + $0x17d8] sm:$0xff]  ;;  %v518_v31 = vld [vmem:[#allocation5 + $0xe88] sm:$0xff] }
 0x191   :  { %1808 = vmatprep.subr.mxu1 %v636_v33  ;;  %1740 = vmatpush2.msra.mxu0 %v626_v36  ;;  %v815_v33 = vld [vmem:[#allocation5 + $0x17d0] sm:$0xff]  ;;  %v510_v36 = vld [vmem:[#allocation5 + $0xe48] sm:$0xff] }
 0x192   :  { %1809 = vmatpush1.msra.mxu1 %v635_v37  ;;  %1741 = vmatprep.subr.mxu0 %v618_v38  ;;  %v807_v37 = vld [vmem:[#allocation5 + $0x1790] sm:$0xff]  ;;  %v509_v38 = vld [vmem:[#allocation5 + $0xe40] sm:$0xff] }
 0x193   :  { %1810 = vmatprep.subr.mxu1 %v915_v39  ;;  %1742 = vmatpush2.msra.mxu0 %v617_v40  ;;  %v806_v39 = vld [vmem:[#allocation5 + $0x1788] sm:$0xff]  ;;  %v501_v40 = vld [vmem:[#allocation5 + $0xe00] sm:$0xff] }
 0x194   :  { %1811 = vmatpush2.msra.mxu1 %v914_v41  ;;  %1743 = vmatprep.subr.mxu0 %v609_v56  ;;  %v798_v41 = vld [vmem:[#allocation5 + $0x1748] sm:$0xff]  ;;  %v500_v56 = vld [vmem:[#allocation5 + $0xdf8] sm:$0xff] }
 0x195   :  { %1812 = vmatprep.subr.mxu1 %v906_v42  ;;  %1744 = vmatpush2.msra.mxu0 %v608_v43  ;;  %v797_v42 = vld [vmem:[#allocation5 + $0x1740] sm:$0xff]  ;;  %v492_v43 = vld [vmem:[#allocation5 + $0xdb8] sm:$0xff] }
 0x196   :  { %1813 = vmatpush2.msra.mxu1 %v905_v45  ;;  %1745 = vmatprep.subr.mxu0 %v600_v46  ;;  %v789_v45 = vld [vmem:[#allocation5 + $0x1700] sm:$0xff]  ;;  %v491_v46 = vld [vmem:[#allocation5 + $0xdb0] sm:$0xff] }
 0x197   :  { %1814 = vmatprep.subr.mxu1 %v897_v47  ;;  %1746 = vmatpush2.msra.mxu0 %v599_v48  ;;  %v788_v47 = vld [vmem:[#allocation5 + $0x16f8] sm:$0xff] }
 0x198   :  { %1815 = vmatpush2.msra.mxu1 %v896_v49  ;;  %1747 = vmatprep.subr.mxu0 %v591_v50  ;;  %v780_v48 = vld [vmem:[#allocation5 + $0x16b8] sm:$0xff]  ;;  %v779_v50 = vld [vmem:[#allocation5 + $0x16b0] sm:$0xff] }
 0x199   :  { %1816 = vmatprep.subr.mxu1 %v888_v51  ;;  %1748 = vmatpush2.msra.mxu0 %v590_v52  ;;  %v340_v49 = vld [vmem:[#allocation5 + $0x8f8] sm:$0xff]  ;;  %v331_v52 = vld [vmem:[#allocation5 + $0x8b0] sm:$0xff] }
 0x19a   :  { %1817 = vmatpush2.msra.mxu1 %v887_v54  ;;  %1749 = vmatprep.subr.mxu0 %v582_v55  ;;  %v196_v51 = vld [vmem:[#allocation5 + $0x478] sm:$0xff]  ;;  %v187_v55 = vld [vmem:[#allocation5 + $0x430] sm:$0xff] }
 0x19b   :  { %1818 = vmatprep.subr.mxu1 %v879_v57  ;;  %1750 = vmatpush2.msra.mxu0 %v581_v58  ;;  %v628_v54 = vld [vmem:[#allocation5 + $0x11f8] sm:$0xff]  ;;  %v322_v58 = vld [vmem:[#allocation5 + $0x868] sm:$0xff] }
 0x19c   :  { %1819 = vmatpush2.msra.mxu1 %v878_v60  ;;  %1751 = vmatprep.subr.mxu0 %v573_v61  ;;  %v484_v57 = vld [vmem:[#allocation5 + $0xd78] sm:$0xff]  ;;  %v619_v60 = vld [vmem:[#allocation5 + $0x11b0] sm:$0xff]  ;;  %v178_v61 = vld [vmem:[#allocation5 + $0x3e8] sm:$0xff] }
 0x19d   :  { %1820 = vmatprep.subr.mxu1 %v870_v62  ;;  %1752 = vmatpush2.msra.mxu0 %v572_v63  ;;  %v475_v62 = vld [vmem:[#allocation5 + $0xd30] sm:$0xff]  ;;  %v313_v63 = vld [vmem:[#allocation5 + $0x820] sm:$0xff] }
 0x19e   :  { %1821 = vmatpush2.msra.mxu1 %v869_v2  ;;  %1753 = vmatprep.subr.mxu0 %v564_v4  ;;  %v610_v2 = vld [vmem:[#allocation5 + $0x1168] sm:$0xff]  ;;  %v169_v4 = vld [vmem:[#allocation5 + $0x3a0] sm:$0xff] }
 0x19f   :  { %1822 = vmatprep.subr.mxu1 %v861_v5  ;;  %1754 = vmatpush2.msra.mxu0 %v563_v7  ;;  %v466_v5 = vld [vmem:[#allocation5 + $0xce8] sm:$0xff]  ;;  %v304_v7 = vld [vmem:[#allocation5 + $0x7d8] sm:$0xff] }
 0x1a0   :  { %1823 = vmatpush2.msra.mxu1 %v860_v8  ;;  %1755 = vmatprep.subr.mxu0 %v555_v9  ;;  %v601_v8 = vld [vmem:[#allocation5 + $0x1120] sm:$0xff]  ;;  %v160_v9 = vld [vmem:[#allocation5 + $0x358] sm:$0xff] }
 0x1a1   :  { %1824 = vmatprep.subr.mxu1 %v852_v11  ;;  %1756 = vmatpush2.msra.mxu0 %v554_v13  ;;  %v457_v11 = vld [vmem:[#allocation5 + $0xca0] sm:$0xff]  ;;  %v295_v13 = vld [vmem:[#allocation5 + $0x790] sm:$0xff] }
 0x1a2   :  { %1825 = vmatpush2.msra.mxu1 %v851_v14  ;;  %1757 = vmatprep.subr.mxu0 %v546_v15  ;;  %v592_v14 = vld [vmem:[#allocation5 + $0x10d8] sm:$0xff]  ;;  %v151_v15 = vld [vmem:[#allocation5 + $0x310] sm:$0xff] }
 0x1a3   :  { %1826 = vmatprep.subr.mxu1 %v843_v16  ;;  %1758 = vmatpush2.msra.mxu0 %v545_v17  ;;  %v448_v16 = vld [vmem:[#allocation5 + $0xc58] sm:$0xff]  ;;  %v286_v17 = vld [vmem:[#allocation5 + $0x748] sm:$0xff] }
 0x1a4   :  { %1827 = vmatpush2.msra.mxu1 %v842_v18  ;;  %1759 = vmatprep.subr.mxu0 %v537_v19  ;;  %v583_v18 = vld [vmem:[#allocation5 + $0x1090] sm:$0xff]  ;;  %v142_v19 = vld [vmem:[#allocation5 + $0x2c8] sm:$0xff] }
 0x1a5   :  { %1828 = vmatprep.subr.mxu1 %v834_v20  ;;  %1760 = vmatpush2.msra.mxu0 %v536_v21  ;;  %v439_v20 = vld [vmem:[#allocation5 + $0xc10] sm:$0xff]  ;;  %v277_v21 = vld [vmem:[#allocation5 + $0x700] sm:$0xff] }
 0x1a6   :  { %1829 = vmatpush2.msra.mxu1 %v833_v23  ;;  %1761 = vmatprep.subr.mxu0 %v528_v24  ;;  %v574_v23 = vld [vmem:[#allocation5 + $0x1048] sm:$0xff]  ;;  %v133_v24 = vld [vmem:[#allocation5 + $0x280] sm:$0xff] }
 0x1a7   :  { %1830 = vmatprep.subr.mxu1 %v825_v26  ;;  %1762 = vmatpush2.msra.mxu0 %v527_v27  ;;  %v430_v26 = vld [vmem:[#allocation5 + $0xbc8] sm:$0xff]  ;;  %v268_v27 = vld [vmem:[#allocation5 + $0x6b8] sm:$0xff] }
 0x1a8   :  { %1831 = vmatpush2.msra.mxu1 %v824_v28  ;;  %1763 = vmatprep.subr.mxu0 %v519_v29  ;;  %v565_v28 = vld [vmem:[#allocation5 + $0x1000] sm:$0xff]  ;;  %v124_v29 = vld [vmem:[#allocation5 + $0x238] sm:$0xff] }
 0x1a9   :  { %1832 = vmatprep.subr.mxu1 %v816_v30  ;;  %1764 = vmatpush2.msra.mxu0 %v518_v31  ;;  %v421_v30 = vld [vmem:[#allocation5 + $0xb80] sm:$0xff]  ;;  %v259_v31 = vld [vmem:[#allocation5 + $0x670] sm:$0xff] }
 0x1aa   :  { %1833 = vmatpush2.msra.mxu1 %v815_v33  ;;  %1765 = vmatprep.subr.mxu0 %v510_v36  ;;  %v556_v33 = vld [vmem:[#allocation5 + $0xfb8] sm:$0xff]  ;;  %v115_v36 = vld [vmem:[#allocation5 + $0x1f0] sm:$0xff] }
 0x1ab   :  { %1834 = vmatprep.subr.mxu1 %v807_v37  ;;  %1766 = vmatpush2.msra.mxu0 %v509_v38  ;;  %v412_v37 = vld [vmem:[#allocation5 + $0xb38] sm:$0xff]  ;;  %v250_v38 = vld [vmem:[#allocation5 + $0x628] sm:$0xff] }
 0x1ac   :  { %1835 = vmatpush2.msra.mxu1 %v806_v39  ;;  %1767 = vmatprep.subr.mxu0 %v501_v40  ;;  %v547_v39 = vld [vmem:[#allocation5 + $0xf70] sm:$0xff]  ;;  %v106_v40 = vld [vmem:[#allocation5 + $0x1a8] sm:$0xff] }
 0x1ad   :  { %1836 = vmatprep.subr.mxu1 %v798_v41  ;;  %1768 = vmatpush2.msra.mxu0 %v500_v56  ;;  %v403_v41 = vld [vmem:[#allocation5 + $0xaf0] sm:$0xff]  ;;  %v241_v56 = vld [vmem:[#allocation5 + $0x5e0] sm:$0xff] }
 0x1ae   :  { %1837 = vmatpush2.msra.mxu1 %v797_v42  ;;  %1769 = vmatprep.subr.mxu0 %v492_v43  ;;  %v538_v42 = vld [vmem:[#allocation5 + $0xf28] sm:$0xff]  ;;  %v97_v43 = vld [vmem:[#allocation5 + $0x160] sm:$0xff] }
 0x1af   :  { %1838 = vmatprep.subr.mxu1 %v789_v45  ;;  %1770 = vmatpush2.msra.mxu0 %v491_v46  ;;  %v394_v45 = vld [vmem:[#allocation5 + $0xaa8] sm:$0xff]  ;;  %v232_v46 = vld [vmem:[#allocation5 + $0x598] sm:$0xff] }
 0x1b0   :  { %1771 = vmatprep.mubr.f32.mxu0 %v2413_v10  ;;  %1839 = vmatpush2.msra.mxu1 %v788_v47  ;;  %v529_v47 = vld [vmem:[#allocation5 + $0xee0] sm:$0xff] }
 0x1b1   :  { %1772 = vmatmul.mubr.f32.vlgmr.msra.gmra.mxu0 %v2418_v12  ;;  %1840 = vmatprep.subr.mxu1 %v780_v48  ;;  %v88_v48 = vld [vmem:[#allocation5 + $0x118] sm:$0xff] }
 0x1b2   :  { %2156 = vmatprep.subr.mxu0 %v340_v49  ;;  %1841 = vmatpush2.msra.mxu1 %v779_v50  ;;  %v385_v49 = vld [vmem:[#allocation5 + $0xa60] sm:$0xff]  ;;  %v223_v50 = vld [vmem:[#allocation5 + $0x550] sm:$0xff] }
 0x1b3   :  { %1842 = vmatprep.mubr.f32.mxu1 %v2428_v32  ;;  %2157 = vmatpush3.msra.mxu0 %v196_v51  ;;  %v520_v51 = vld [vmem:[#allocation5 + $0xe98] sm:$0xff] }
 0x1b4   :  { %1843 = vmatmul.mubr.f32.vlgmr.msra.gmra.mxu1 %v2433_v34  ;;  %2158 = vmatprep.subr.mxu0 %v331_v52  ;;  %v79_v52 = vld [vmem:[#allocation5 + $0xd0] sm:$0xff] }
 0x1b5   :  { %2191 = vmatprep.subr.mxu1 %v628_v54  ;;  %2159 = vmatpush3.msra.mxu0 %v187_v55  ;;  %v376_v54 = vld [vmem:[#allocation5 + $0xa18] sm:$0xff]  ;;  %v214_v55 = vld [vmem:[#allocation5 + $0x508] sm:$0xff] }
 0x1b6   :  { %2192 = vmatpush3.msra.mxu1 %v484_v57  ;;  %2160 = vmatprep.subr.mxu0 %v322_v58  ;;  %v511_v57 = vld [vmem:[#allocation5 + $0xe50] sm:$0xff]  ;;  %v70_v58 = vld [vmem:[#allocation5 + $0x88] sm:$0xff] }
 0x1b7   :  { %2193 = vmatprep.subr.mxu1 %v619_v60  ;;  %2161 = vmatpush3.msra.mxu0 %v178_v61  ;;  %v367_v60 = vld [vmem:[#allocation5 + $0x9d0] sm:$0xff]  ;;  %v205_v61 = vld [vmem:[#allocation5 + $0x4c0] sm:$0xff] }
 0x1b8   :  { %2194 = vmatpush3.msra.mxu1 %v475_v62  ;;  %2162 = vmatprep.subr.mxu0 %v313_v63  ;;  %v502_v62 = vld [vmem:[#allocation5 + $0xe08] sm:$0xff]  ;;  %v61_v63 = vld [vmem:[#allocation5 + $0x40] sm:$0xff] }
 0x1b9   :  { %2195 = vmatprep.subr.mxu1 %v610_v2  ;;  %2163 = vmatpush3.msra.mxu0 %v169_v4  ;;  %v358_v2 = vld [vmem:[#allocation5 + $0x988] sm:$0xff]  ;;  %v493_v4 = vld [vmem:[#allocation5 + $0xdc0] sm:$0xff] }
 0x1ba   :  { %2196 = vmatpush3.msra.mxu1 %v466_v5  ;;  %2164 = vmatprep.subr.mxu0 %v304_v7  ;;  %v916_v5 = vld [vmem:[#allocation5 + $0x1af8] sm:$0xff]  ;;  %v349_v7 = vld [vmem:[#allocation5 + $0x940] sm:$0xff] }
 0x1bb   :  { %2197 = vmatprep.subr.mxu1 %v601_v8  ;;  %2165 = vmatpush3.msra.mxu0 %v160_v9  ;;  %v772_v8 = vld [vmem:[#allocation5 + $0x1678] sm:$0xff]  ;;  %v907_v9 = vld [vmem:[#allocation5 + $0x1ab0] sm:$0xff] }
 0x1bc   :  { %2198 = vmatpush3.msra.mxu1 %v457_v11  ;;  %2166 = vmatprep.subr.mxu0 %v295_v13  ;;  %v763_v11 = vld [vmem:[#allocation5 + $0x1630] sm:$0xff]  ;;  %v898_v13 = vld [vmem:[#allocation5 + $0x1a68] sm:$0xff] }
 0x1bd   :  { %2199 = vmatprep.subr.mxu1 %v592_v14  ;;  %2167 = vmatpush3.msra.mxu0 %v151_v15  ;;  %v754_v14 = vld [vmem:[#allocation5 + $0x15e8] sm:$0xff]  ;;  %v889_v15 = vld [vmem:[#allocation5 + $0x1a20] sm:$0xff] }
 0x1be   :  { %2200 = vmatpush3.msra.mxu1 %v448_v16  ;;  %2168 = vmatprep.subr.mxu0 %v286_v17  ;;  %v736_v16 = vld [vmem:[#allocation5 + $0x1558] sm:$0xff]  ;;  %v871_v17 = vld [vmem:[#allocation5 + $0x1990] sm:$0xff] }
 0x1bf   :  { %2201 = vmatprep.subr.mxu1 %v583_v18  ;;  %2169 = vmatpush3.msra.mxu0 %v142_v19  ;;  %v862_v18 = vld [vmem:[#allocation5 + $0x1948] sm:$0xff]  ;;  %v853_v19 = vld [vmem:[#allocation5 + $0x1900] sm:$0xff] }
 0x1c0   :  { %2202 = vmatpush3.msra.mxu1 %v439_v20  ;;  %2170 = vmatprep.subr.mxu0 %v277_v21  ;;  %v709_v20 = vld [vmem:[#allocation5 + $0x1480] sm:$0xff]  ;;  %v700_v21 = vld [vmem:[#allocation5 + $0x1438] sm:$0xff] }
 0x1c1   :  { %2203 = vmatprep.subr.mxu1 %v574_v23  ;;  %2171 = vmatpush3.msra.mxu0 %v133_v24  ;;  %v835_v23 = vld [vmem:[#allocation5 + $0x1870] sm:$0xff] }
 0x1c2   :  { %2204 = vmatpush3.msra.mxu1 %v430_v26  ;;  %2172 = vmatprep.subr.mxu0 %v268_v27  ;;  %v691_v24 = vld [vmem:[#allocation5 + $0x13f0] sm:$0xff]  ;;  %v826_v26 = vld [vmem:[#allocation5 + $0x1828] sm:$0xff] }
 0x1c3   :  { %2205 = vmatprep.subr.mxu1 %v565_v28  ;;  %2173 = vmatpush3.msra.mxu0 %v124_v29  ;;  %v682_v27 = vld [vmem:[#allocation5 + $0x13a8] sm:$0xff]  ;;  %v817_v28 = vld [vmem:[#allocation5 + $0x17e0] sm:$0xff] }
 0x1c4   :  { %2206 = vmatpush3.msra.mxu1 %v421_v30  ;;  %2174 = vmatprep.subr.mxu0 %v259_v31  ;;  %v673_v29 = vld [vmem:[#allocation5 + $0x1360] sm:$0xff]  ;;  %v808_v30 = vld [vmem:[#allocation5 + $0x1798] sm:$0xff] }
 0x1c5   :  { %2207 = vmatprep.subr.mxu1 %v556_v33  ;;  %2175 = vmatpush3.msra.mxu0 %v115_v36  ;;  %v664_v31 = vld [vmem:[#allocation5 + $0x1318] sm:$0xff]  ;;  %v799_v33 = vld [vmem:[#allocation5 + $0x1750] sm:$0xff] }
 0x1c6   :  { %2208 = vmatpush3.msra.mxu1 %v412_v37  ;;  %2176 = vmatprep.subr.mxu0 %v250_v38  ;;  %v655_v36 = vld [vmem:[#allocation5 + $0x12d0] sm:$0xff]  ;;  %v790_v37 = vld [vmem:[#allocation5 + $0x1708] sm:$0xff] }
 0x1c7   :  { %2209 = vmatprep.subr.mxu1 %v547_v39  ;;  %2177 = vmatpush3.msra.mxu0 %v106_v40  ;;  %v646_v38 = vld [vmem:[#allocation5 + $0x1288] sm:$0xff]  ;;  %v781_v39 = vld [vmem:[#allocation5 + $0x16c0] sm:$0xff] }
 0x1c8   :  { %2210 = vmatpush3.msra.mxu1 %v403_v41  ;;  %2178 = vmatprep.subr.mxu0 %v241_v56  ;;  %v637_v40 = vld [vmem:[#allocation5 + $0x1240] sm:$0xff]  ;;  %v1063_v41 = vpop.f32.mrf.mxu0  ;;  %v1134_v56 = vpop.f32.mrf.mxu1 }
 0x1c9   :  { %2211 = vmatprep.subr.mxu1 %v538_v42  ;;  %2179 = vmatpush3.msra.mxu0 %v97_v43 }
 0x1ca   :  { %2212 = vmatpush3.msra.mxu1 %v394_v45  ;;  %2180 = vmatprep.subr.mxu0 %v232_v46  ;;  %v1065_v42 = vpop.f32.mrf.mxu0  ;;  %v1136_v43 = vpop.f32.mrf.mxu1 }
 0x1cb   :  { %2213 = vmatprep.subr.mxu1 %v529_v47  ;;  %2181 = vmatpush3.msra.mxu0 %v88_v48 }
 0x1cc   :  { %2214 = vmatpush3.msra.mxu1 %v385_v49  ;;  %2182 = vmatprep.subr.mxu0 %v223_v50  ;;  %v1205_v45 = vpop.f32.mrf.mxu0  ;;  %v1276_v46 = vpop.f32.mrf.mxu1 }
 0x1cd   :  { %2215 = vmatprep.subr.mxu1 %v520_v51  ;;  %2183 = vmatpush3.msra.mxu0 %v79_v52 }
 0x1ce   :  { %2216 = vmatpush3.msra.mxu1 %v376_v54  ;;  %2184 = vmatprep.subr.mxu0 %v214_v55  ;;  %v1207_v47 = vpop.f32.mrf.mxu0  ;;  %v1278_v48 = vpop.f32.mrf.mxu1  ;;  %v917_v54 = vld [vmem:[#allocation7] sm:$0xff] }
 0x1cf   :  { %2217 = vmatprep.subr.mxu1 %v511_v57  ;;  %2185 = vmatpush3.msra.mxu0 %v70_v58  ;;  %v967_v55 = vrot.slane %v917_v54, %v934_v1  ;;  %v982_v1 = vsub.s32 7, %v2391_v44 }
 0x1d0   :  { %2218 = vmatpush3.msra.mxu1 %v367_v60  ;;  %2186 = vmatprep.subr.mxu0 %v205_v61  ;;  %v1347_v49 = vpop.f32.mrf.mxu0  ;;  %v1418_v50 = vpop.f32.mrf.mxu1  ;;  %v963_v60 = vrot.slane %v917_v54, %v930_v3  ;;  %v955_v61 = vrot.slane %v917_v54, %v922_v59  ;;  %v2359_v59 = vmov 1966171168  }
 0x1d1   :  { %2219 = vmatprep.subr.mxu1 %v502_v62  ;;  %2187 = vmatpush3.msra.mxu0 %v61_v63  ;;  %v1279_v62 = vadd.f32 %v1278_v48, %v967_v55  ;;  %v975_v63 = vrot.slane %v917_v54, %v942_v22 }
 0x1d2   :  { %1913 = vmatprep.mubr.f32.mxu0 %v2400_v0  ;;  %2220 = vmatpush3.msra.mxu1 %v358_v2  ;;  %v745_v0 = vld [vmem:[#allocation5 + $0x15a0] sm:$0xff]  ;;  %v1349_v51 = vpop.f32.mrf.mxu0  ;;  %v1420_v52 = vpop.f32.mrf.mxu1 }
 0x1d3   :  { %1914 = vmatmul.mubr.f32.vlgmr.msra.gmra.mxu0 %v2407_v6  ;;  %2221 = vmatprep.subr.mxu1 %v493_v4  ;;  %v880_v6 = vld [vmem:[#allocation5 + $0x19d8] sm:$0xff] }
 0x1d4   :  { %2226 = vmatprep.subr.mxu0 %v916_v5  ;;  %2222 = vmatpush3.msra.mxu1 %v349_v7  ;;  %v978_v5 = vsub.s32 6, %v2391_v44 }
 0x1d5   :  { %1983 = vmatprep.mubr.f32.mxu1 %v2413_v10  ;;  %2227 = vmatpush3.msra.mxu0 %v772_v8  ;;  %v727_v10 = vld [vmem:[#allocation5 + $0x1510] sm:$0xff]  ;;  %v1277_v8 = vadd.f32 %v1276_v46, %v963_v60  ;;  %v2155_v60 = vld [vmem:[#allocation7 + $0x8] ss:$0 sm:$0xff] }
 0x1d6   :  { %1984 = vmatmul.mubr.f32.vlgmr.msra.gmra.mxu1 %v2418_v12  ;;  %2228 = vmatprep.subr.mxu0 %v907_v9  ;;  %v718_v12 = vld [vmem:[#allocation5 + $0x14c8] sm:$0xff]  ;;  %v1350_v9 = vadd.f32 %v1349_v51, %v1279_v62  ;;  %v979_v22 = vrot.slane %v917_v54, %v978_v5 }
 0x1d7   :  { %2229 = vmatpush3.msra.mxu0 %v763_v11  ;;  %2053 = vmatprep.mubr.f32.mxu0 %v2428_v32  ;;  %v844_v32 = vld [vmem:[#allocation5 + $0x18b8] sm:$0xff] }
 0x1d8   :  { %2230 = vmatprep.subr.mxu0 %v898_v13  ;;  %v1064_v13 = vadd.f32 %v1063_v41, %v955_v61 }
 0x1d9   :  { %2231 = vmatpush3.msra.mxu0 %v754_v14  ;;  %v2073_v14 = vunpack.c.l.s4 %v2359_v59 }
 0x1da   :  { %2232 = vmatprep.subr.mxu0 %v889_v15  ;;  %v1348_v15 = vadd.f32 %v1347_v49, %v1277_v8 }
 0x1db   :  { %2233 = vmatpush3.msra.mxu0 %v745_v0 }
 0x1dc   :  { %2234 = vmatprep.subr.mxu0 %v880_v6  ;;  %v983_v6 = vrot.slane %v917_v54, %v982_v1 }
 0x1dd   :  { %2235 = vmatpush3.msra.mxu0 %v736_v16 }
 0x1de   :  { %2236 = vmatprep.subr.mxu0 %v871_v17  ;;  %v1421_v17 = vadd.f32 %v1420_v52, %v1350_v9 }
 0x1df   :  { %2237 = vmatpush3.msra.mxu0 %v727_v10 }
 0x1e0   :  { %2238 = vmatprep.subr.mxu0 %v862_v18 }
 0x1e1   :  { %2239 = vmatpush3.msra.mxu0 %v718_v12 }
 0x1e2   :  { %2240 = vmatprep.subr.mxu0 %v853_v19  ;;  %v1135_v19 = vadd.f32 %v1134_v56, %v1064_v13 }
 0x1e3   :  { %2241 = vmatpush3.msra.mxu0 %v709_v20  ;;  %v2074_v20 = vunpack.c.0.s8 %v2073_v14 }
 0x1e4   :  { %2242 = vmatprep.subr.mxu0 %v844_v32 }
 0x1e5   :  { %2243 = vmatpush3.msra.mxu0 %v700_v21  ;;  %v1419_v21 = vadd.f32 %v1418_v50, %v1348_v15 }
 0x1e6   :  { %2244 = vmatprep.subr.mxu0 %v835_v23 }
 0x1e7   :  { %2245 = vmatpush3.msra.mxu0 %v691_v24 }
 0x1e8   :  { %2246 = vmatprep.subr.mxu0 %v826_v26  ;;  %v1206_v26 = vadd.f32 %v1205_v45, %v1135_v19 }
 0x1e9   :  { %2247 = vmatpush3.msra.mxu0 %v682_v27 }
 0x1ea   :  { %2248 = vmatprep.subr.mxu0 %v817_v28  ;;  %v2069_v28 = vcombine.low %v1419_v21, %v1421_v17 }
 0x1eb   :  { %2249 = vmatpush3.msra.mxu0 %v673_v29 }
 0x1ec   :  { %2250 = vmatprep.subr.mxu0 %v808_v30 }
 0x1ed   :  { %2251 = vmatpush3.msra.mxu0 %v664_v31  ;;  %v1489_v57 = vpop.f32.mrf.mxu0 }
 0x1ee   :  { %2252 = vmatprep.subr.mxu0 %v799_v33 }
 0x1ef   :  { %2253 = vmatpush3.msra.mxu0 %v655_v36  ;;  %v1491_v2 = vpop.f32.mrf.mxu0 }
 0x1f0   :  { %2254 = vmatprep.subr.mxu0 %v790_v37  ;;  %v1560_v58 = vpop.f32.mrf.mxu1  ;;  %v1492_v0 = vadd.f32 %v1491_v2, %v975_v63 }
 0x1f1   :  { %2255 = vmatpush3.msra.mxu0 %v646_v38 }
 0x1f2   :  { %2256 = vmatprep.subr.mxu0 %v781_v39  ;;  %v1562_v4 = vpop.f32.mrf.mxu1  ;;  %v2077_v39 = vsub.s32 %v2074_v20, %v2391_v44 }
 0x1f3   :  { %2257 = vmatpush3.msra.mxu0 %v637_v40  ;;  %v1563_v23 = vadd.f32 %v1562_v4, %v1492_v0 }
 0x1f4   :  { %2054 = vmatmul.mubr.f32.vlgmr.msra.gmra.mxu0 %v2433_v34  ;;  %v959_v34 = vrot.slane %v917_v54, %v926_v53  ;;  %v971_v53 = vrot.slane %v917_v54, %v938_v25  ;;  %v2085_v56 = vrot.slane %v2069_v28, %v2077_v39 }
 0x1f6   :  { %v1066_v7 = vadd.f32 %v1065_v42, %v959_v34  ;;  %v1490_v10 = vadd.f32 %v1489_v57, %v971_v53 }
 0x1f8   :  { %v1137_v16 = vadd.f32 %v1136_v43, %v1066_v7  ;;  %v1561_v29 = vadd.f32 %v1560_v58, %v1490_v10 }
 0x1fa   :  { %v1208_v32 = vadd.f32 %v1207_v47, %v1137_v16 }
 0x1fc   :  { %v2068_v38 = vcombine.low %v1206_v26, %v1208_v32 }
 0x1fe   :  { %v2078_v47 = vrot.slane %v2068_v38, %v2077_v39 }
 0x200   :  { %v2100_v45 = vcombine.low %v2078_v47, %v2085_v56 }
 0x202   :  { %v2108_v52 = vrot.slane %v2100_v45, %v2077_v39 }
 0x22f   :  { %v1631_v3 = vpop.f32.mrf.mxu0 }
 0x230   :  { %v1632_v40 = vadd.f32 %v1631_v3, %v1561_v29 }
 0x231   :  { %v1633_v18 = vpop.f32.mrf.mxu0 }
 0x232   :  { %v1634_v30 = vadd.f32 %v1633_v18, %v1563_v23 }
 0x233   :  { %v1702_v11 = vpop.f32.mrf.mxu1 }
 0x234   :  { %v1703_v25 = vadd.f32 %v1702_v11, %v979_v22  ;;  %v2070_v42 = vcombine.low %v1632_v40, %v1634_v30 }
 0x235   :  { %v1704_v12 = vpop.f32.mrf.mxu1 }
 0x236   :  { %v1705_v27 = vadd.f32 %v1704_v12, %v983_v6  ;;  %v2092_v49 = vrot.slane %v2070_v42, %v2077_v39 }
 0x271   :  { %v1773_v24 = vpop.f32.mrf.mxu0 }
 0x272   :  { %v1774_v31 = vadd.f32 %v1773_v24, %v1703_v25 }
 0x273   :  { %v1775_v33 = vpop.f32.mrf.mxu0 }
 0x274   :  { %v1776_v36 = vadd.f32 %v1775_v33, %v1705_v27  ;;  %v1844_v37 = vpop.f32.mrf.mxu1 }
 0x275   :  { %v1845_v43 = vadd.f32 %v1844_v37, %v1774_v31 }
 0x276   :  { %v1846_v41 = vpop.f32.mrf.mxu1 }
 0x277   :  { %v1847_v46 = vadd.f32 %v1846_v41, %v1776_v36 }
 0x279   :  { %v2071_v48 = vcombine.low %v1845_v43, %v1847_v46 }
 0x27b   :  { %v2099_v50 = vrot.slane %v2071_v48, %v2077_v39 }
 0x27d   :  { %v2101_v51 = vcombine.low %v2092_v49, %v2099_v50 }
 0x27f   :  { %v2115_v54 = vrot.slane %v2101_v51, %v2077_v39 }
 0x281   :  { %v2116_v55 = vcombine.low %v2108_v52, %v2115_v54 }
 0x283   :  { %2133 = vst [vmem:[#allocation8] sm:$0xff] %v2116_v55 }
 0x293   :  { %v2188_v57 = vpop.f32.mrf.mxu0 }
 0x295   :  { %v2189_v58 = vpop.f32.mrf.mxu0 }
 0x296   :  { %v2223_v34 = vpop.f32.mrf.mxu1  ;;  %v2190_v44 = vadd.f32 %v2189_v58, %v2188_v57 }
 0x298   :  { %v2224_v61 = vpop.f32.mrf.mxu1  ;;  %v1916_v62 = vadd.f32 %v2190_v44, %v2155_v60 }
 0x299   :  { %v2225_v63 = vadd.f32 %v2224_v61, %v2223_v34 }
 0x29b   :  { %v1986_v5 = vadd.f32 %v2225_v63, %v1916_v62 }
 0x2b4   :  { %v2258_v2 = vpop.f32.mrf.mxu0 }
 0x2b6   :  { %v2259_v4 = vpop.f32.mrf.mxu0 }
 0x2b7   :  { %v2260_v1 = vadd.f32 %v2259_v4, %v2258_v2 }
 0x2b9   :  { %v2056_v7 = vadd.f32 %v2260_v1, %v1986_v5 }
 0x2bb   :  { %v2123_v8 = vrot.slane %v2056_v7, %v2077_v39 }
 0x2bd   :  { %v2130_v9 = vrot.slane %v2123_v8, %v2077_v39 }
 0x2bf   :  { %2138 = vst.msk [vmem:[#allocation8 + $0x8] sm:$0x1] %vm2136_vm0, %v2130_v9 }
 0x2c0   :  { %2339 = shalt.err (!%p2336_p5)
}
 0x2c1   :  { %2148 = dma.vmem_to_hbm [thread:$0]  %s2146_s2, 144, %s2483_s3, [#allocation4]  }
 0x2c2   :  { %2352 = dma.done.wait [#allocation4], 144  }
 0x2c3   :  { %2353 = vsyncadd [#allocation4], 4294967152 }
 0x2c4   :  { %2152 = vsyncpa [#allocation3], 1 }
 0x2c5   :  { %2153 = vsyncpa [#allocation6], 1 }
 0x2c6   :  { %2154 = vsyncpa [#allocation4], 1 }

</bundles_post_ra>
